<compile_context>
chip_gen: v6e
topology: v6e:2x2x1
jax: 0.10.0
libtpu: 0.0.40
codegen_flags: <defaults>
</compile_context>

<pallas_src>
import functools

import jax
import jax.numpy as jnp
from jax.experimental import pallas as pl
from jax.experimental.pallas import tpu as pltpu


def _round_up(x, m):
    return (x + m - 1) // m * m


def _pick_time_tile(T):
    for cand in (512, 256, 128):
        if T % cand == 0:
            return cand
    return T


# ----------------------------------------------------------------------------
# Kernel 1: fused hidden stack (input conv + 3 residual blocks), one batch
# element per grid step, channels-first (C, T) layout resident in VMEM.
# Emits the im2col'ed final activation (K_res*H, T) consumed by the head matmul.
# ----------------------------------------------------------------------------
def _hidden_stack_kernel(x_ref, w_in_ref, b_in_ref, w_res_ref, b_res_ref,
                         xk_ref, *, K_in, K_res, slope):
    # x_ref:     (1, Cc_pad, T)     conditioning (channels padded to mult. of 8)
    # w_in_ref:  (H, K_in*Cc_pad)   input conv folded into a single matmul
    # b_in_ref:  (H, 1)
    # w_res_ref: (6, H, K_res*H)    3 residual blocks x 2 convs
    # b_res_ref: (6, H, 1)
    # xk_ref:    (1, K_res*H, T)    im2col of the final hidden activation
    T = x_ref.shape[2]

    def im2col(x, K):
        # (C, T) -> (K*C, T); row block k holds x shifted so column t reads
        # x[:, t + (k - pad)] with zeros outside [0, T)   ('same' conv, odd K).
        pad = (K - 1) // 2
        if pad == 0:
            return x
        t_idx = jax.lax.broadcasted_iota(jnp.int32, (1, T), 1)
        parts = []
        for k in range(K):
            d = k - pad
            if d == 0:
                parts.append(x)
            else:
                # lane roll (XLU slot) + boundary mask instead of unaligned
                # slices of a padded buffer -> no VMEM re-copies per tap.
                sh = pltpu.roll(x, shift=(-d) % T, axis=1)
                valid = jnp.logical_and(t_idx >= -d, t_idx < T - d)
                parts.append(jnp.where(valid, sh, jnp.zeros_like(sh)))
        return jnp.concatenate(parts, axis=0)   # sublane concat (C mult. of 8)

    def conv(x, w2, b2, K):
        # one MXU contraction over K*Cin, fused bias + LeakyReLU
        y = jnp.dot(w2, im2col(x, K), preferred_element_type=jnp.float32) + b2
        return jnp.where(y >= 0, y, y * slope)

    x = x_ref[0].astype(jnp.float32)                       # (Cc_pad, T)
    h = conv(x, w_in_ref[...], b_in_ref[...], K_in)        # input_conv + LReLU
    for blk in range(3):                                   # residual blocks
        t1 = conv(h,  w_res_ref[2 * blk],     b_res_ref[2 * blk],     K_res)
        t2 = conv(t1, w_res_ref[2 * blk + 1], b_res_ref[2 * blk + 1], K_res)
        h = h + t2                                         # Dropout(p=0) == id
    xk_ref[0] = im2col(h, K_res).astype(xk_ref.dtype)      # feed to the heads


def hidden_stack_pallas(c_nct, params, cfg, *, slope):
    """Fused input_conv + 3 residual blocks.  c_nct: (B, cond_ch, T) NCW.

    Returns xk: (B, kc*H, T), the im2col'ed final hidden activation.
    """
    B, Cc, T = c_nct.shape
    H = cfg["kpnet_hidden"]
    kc = cfg["kpnet_conv_size"]
    K_in = 5
    Cc_pad = _round_up(Cc, 8)          # sublane-align the tiny cond-channel dim
    x_in = jnp.pad(c_nct, ((0, 0), (0, Cc_pad - Cc), (0, 0)))

    # Conv weights (K, Cin, Cout) -> single-matmul form (Cout, K*Cin); column
    # order k*Cin + ci matches im2col's row order.  (Tiny one-time prep in XLA.)
    w_in = jnp.pad(params["in_w"], ((0, 0), (0, Cc_pad - Cc), (0, 0)))
    w_in2 = w_in.reshape(K_in * Cc_pad, H).T                  # (H, K_in*Cc_pad)
    b_in2 = params["in_b"].reshape(H, 1)
    w_res = jnp.stack([params[f"res{i}_w{j}"].reshape(kc * H, H).T
                       for i in range(3) for j in (1, 2)])    # (6, H, kc*H)
    b_res = jnp.stack([params[f"res{i}_b{j}"].reshape(H, 1)
                       for i in range(3) for j in (1, 2)])    # (6, H, 1)

    KH = kc * H
    kern = functools.partial(_hidden_stack_kernel, K_in=K_in, K_res=kc,
                             slope=slope)
    # TODO(synk): for very long T with B == 1 (v7x has 2 TCs) add a halo'd
    # T-tile grid axis here too; the hidden activation is tiny, so full-T
    # blocks are fine for typical UnivNet conditioning lengths.
    return pl.pallas_call(
        kern,
        out_shape=jax.ShapeDtypeStruct((B, KH, T), c_nct.dtype),
        grid=(B,),
        in_specs=[
            pl.BlockSpec((1, Cc_pad, T), lambda b: (b, 0, 0)),
            pl.BlockSpec((H, K_in * Cc_pad), lambda b: (0, 0)),
            pl.BlockSpec((H, 1), lambda b: (0, 0)),
            pl.BlockSpec((6, H, KH), lambda b: (0, 0, 0)),
            pl.BlockSpec((6, H, 1), lambda b: (0, 0, 0)),
        ],
        out_specs=pl.BlockSpec((1, KH, T), lambda b: (b, 0, 0)),
        compiler_params=pltpu.CompilerParams(dimension_semantics=("parallel",)),
    )(x_in, w_in2, b_in2, w_res, b_res)


# ----------------------------------------------------------------------------
# Kernel 2: fused kernel_conv + bias_conv heads as one Cout/T-tiled matmul.
# xk is already im2col'ed, so each block is a pure MXU contraction and the
# output is written directly in NCW layout.
# ----------------------------------------------------------------------------
def _heads_kernel(xk_ref, w_ref, b_ref, o_ref):
    # xk_ref: (1, KH, tT)   w_ref: (tN, KH)   b_ref: (tN, 1)   o_ref: (1, tN, tT)
    y = jnp.dot(w_ref[...], xk_ref[0], preferred_element_type=jnp.float32)
    o_ref[0] = (y + b_ref[...]).astype(o_ref.dtype)


def heads_pallas(xk, w2, b2, out_dtype):
    """xk: (B, KH, T); w2: (Cout_pad, KH); b2: (Cout_pad, 1) -> (B, Cout_pad, T)."""
    B, KH, T = xk.shape
    Cout_pad = w2.shape[0]
    tN = 256 if Cout_pad % 256 == 0 else 128      # channel tile (pad is mult of 128)
    tT = _pick_time_tile(T)
    grid = (B, T // tT, Cout_pad // tN)           # weight tile innermost: the xk
    return pl.pallas_call(                        # block stays VMEM-resident.
        _heads_kernel,
        out_shape=jax.ShapeDtypeStruct((B, Cout_pad, T), out_dtype),
        grid=grid,
        in_specs=[
            pl.BlockSpec((1, KH, tT), lambda b, t, n: (b, 0, t)),
            pl.BlockSpec((tN, KH),    lambda b, t, n: (n, 0)),
            pl.BlockSpec((tN, 1),     lambda b, t, n: (n, 0)),
        ],
        out_specs=pl.BlockSpec((1, tN, tT), lambda b, t, n: (b, n, t)),
        compiler_params=pltpu.CompilerParams(
            dimension_semantics=("parallel", "parallel", "parallel")),
    )(xk, w2, b2)


# ----------------------------------------------------------------------------
# Parameter construction (deterministic, synthetic) and full forward pass.
# ----------------------------------------------------------------------------
def init_params(key, cfg):
    """All conv weights stored as (K, Cin, Cout); biases as (Cout,)."""
    h = cfg["kpnet_hidden"]
    kc = cfg["kpnet_conv_size"]
    kpnet_kernel_channels = (cfg["conv_in"] * cfg["conv_out"]
                             * cfg["conv_k"] * cfg["conv_layers"])
    kpnet_bias_channels = cfg["conv_out"] * cfg["conv_layers"]

    def conv_param(key, K, cin, cout):
        kw, kb = jax.random.split(key)
        w = 0.1 * jax.random.normal(kw, (K, cin, cout), jnp.float32)
        b = 0.1 * jax.random.normal(kb, (cout,), jnp.float32)
        return w, b

    keys = jax.random.split(key, 16)
    p = {}
    p["in_w"], p["in_b"] = conv_param(keys[0], 5, cfg["cond_channels"], h)
    for i in range(3):
        p[f"res{i}_w1"], p[f"res{i}_b1"] = conv_param(keys[1 + 2 * i], kc, h, h)
        p[f"res{i}_w2"], p[f"res{i}_b2"] = conv_param(keys[2 + 2 * i], kc, h, h)
    p["kernel_w"], p["kernel_b"] = conv_param(keys[10], kc, h, kpnet_kernel_channels)
    p["bias_w"], p["bias_b"] = conv_param(keys[11], kc, h, kpnet_bias_channels)
    return p


def kernel_predictor_forward(c, params, cfg, *, slope=0.1):
    """c: (B, cond_channels, T)  [PyTorch NCW]  ->  (kernels, bias)."""
    B, _, T = c.shape
    H = cfg["kpnet_hidden"]
    kc = cfg["kpnet_conv_size"]
    Ck = cfg["conv_in"] * cfg["conv_out"] * cfg["conv_k"] * cfg["conv_layers"]
    Cb = cfg["conv_out"] * cfg["conv_layers"]

    # Fused hidden stack -> im2col'ed activation, one HBM round-trip total.
    xk = hidden_stack_pallas(c, params, cfg, slope=slope)          # (B, kc*H, T)

    # Fuse both heads along Cout and pad to a channel-dense multiple of 128.
    # NOTE: for production shapes cast xk / w_h2 to bfloat16 here (accumulation
    # stays f32 in the kernel) to halve HBM+VMEM traffic; kept f32 for the
    # tight numerical check of this demo.
    w_h = jnp.concatenate([params["kernel_w"], params["bias_w"]], axis=2)
    b_h = jnp.concatenate([params["kernel_b"], params["bias_b"]], axis=0)
    Cout = Ck + Cb
    Cout_pad = _round_up(Cout, 128)
    w_h = jnp.pad(w_h, ((0, 0), (0, 0), (0, Cout_pad - Cout)))
    b_h = jnp.pad(b_h, ((0, Cout_pad - Cout),))
    w_h2 = w_h.reshape(kc * H, Cout_pad).T                         # (Cout_pad, kc*H)
    b_h2 = b_h.reshape(Cout_pad, 1)

    heads = heads_pallas(xk, w_h2, b_h2, c.dtype)                  # (B, Cout_pad, T)
    k_nct = heads[:, :Ck, :]
    b_nct = heads[:, Ck:Ck + Cb, :]
    kernels = k_nct.reshape(B, cfg["conv_layers"], cfg["conv_in"],
                            cfg["conv_out"], cfg["conv_k"], T)
    bias = b_nct.reshape(B, cfg["conv_layers"], cfg["conv_out"], T)
    return kernels, bias


# ----------------------------------------------------------------------------
# Pure-JAX reference (lax.conv) for correctness checking.
# ----------------------------------------------------------------------------
def _conv1d_ref(x_ntc, w, b, slope=None, residual=None):
    K = w.shape[0]
    pad = (K - 1) // 2
    y = jax.lax.conv_general_dilated(
        x_ntc, w, window_strides=(1,), padding=[(pad, pad)],
        dimension_numbers=("NWC", "WIO", "NWC"))
    y = y + b[None, None, :]
    if slope is not None:
        y = jnp.where(y >= 0, y, slope * y)
    if residual is not None:
        y = y + residual
    return y


def kernel_predictor_ref(c, params, cfg, *, slope=0.1):
    B, _, T = c.shape
    x = jnp.transpose(c, (0, 2, 1))
    x = _conv1d_ref(x, params["in_w"], params["in_b"], slope=slope)
    for i in range(3):
        h = _conv1d_ref(x, params[f"res{i}_w1"], params[f"res{i}_b1"], slope=slope)
        x = _conv1d_ref(h, params[f"res{i}_w2"], params[f"res{i}_b2"],
                        slope=slope, residual=x)
    k = _conv1d_ref(x, params["kernel_w"], params["kernel_b"])
    b = _conv1d_ref(x, params["bias_w"], params["bias_b"])
    k_nct = jnp.transpose(k, (0, 2, 1))
    b_nct = jnp.transpose(b, (0, 2, 1))
    kernels = k_nct.reshape(B, cfg["conv_layers"], cfg["conv_in"],
                            cfg["conv_out"], cfg["conv_k"], T)
    bias = b_nct.reshape(B, cfg["conv_layers"], cfg["conv_out"], T)
    return kernels, bias


# ----------------------------------------------------------------------------
if __name__ == "__main__":
    cfg = dict(
        cond_channels=4,
        conv_in=4,          # conv_in_channels
        conv_out=4,         # conv_out_channels
        conv_layers=2,
        conv_k=3,           # conv_kernel_size
        kpnet_hidden=32,    # kpnet_hidden_channels
        kpnet_conv_size=3,
    )
    B, T = 2, 16

    key = jax.random.PRNGKey(0)
    k_params, k_input = jax.random.split(key)
    params = init_params(k_params, cfg)
    c = jax.random.normal(k_input, (B, cfg["cond_channels"], T), jnp.float32)

    kernels, bias = kernel_predictor_forward(c, params, cfg)
    kernels = jax.block_until_ready(kernels)
    bias = jax.block_until_ready(bias)

    # Sanity-check against a pure-JAX reference implementation.
    kernels_ref, bias_ref = kernel_predictor_ref(c, params, cfg)
    assert kernels.shape == (B, cfg["conv_layers"], cfg["conv_in"],
                             cfg["conv_out"], cfg["conv_k"], T)
    assert bias.shape == (B, cfg["conv_layers"], cfg["conv_out"], T)
    assert jnp.allclose(kernels, kernels_ref, atol=1e-3, rtol=1e-3)
    assert jnp.allclose(bias, bias_ref, atol=1e-3, rtol=1e-3)

    print("KERNEL_OK")
</pallas_src>

<mosaic_0001>
module attributes {stable_mosaic.version = 11 : i64} {
  func.func @_hidden_stack_kernel(%arg0: i32, %arg1: memref<1x8x16xf32, #tpu.memory_space<vmem>>, %arg2: memref<32x40xf32, #tpu.memory_space<vmem>>, %arg3: memref<32x1xf32, #tpu.memory_space<vmem>>, %arg4: memref<6x32x96xf32, #tpu.memory_space<vmem>>, %arg5: memref<6x32x1xf32, #tpu.memory_space<vmem>>, %arg6: memref<1x96x16xf32, #tpu.memory_space<vmem>>) attributes {dimension_semantics = [#tpu.dimension_semantics<parallel>], iteration_bounds = array<i64: 2>, scalar_prefetch = 0 : i64, scratch_operands = 0 : i64, tpu.core_type = #tpu.core_type<tc>, window_params = [{transform_indices = @transform_0, window_bounds = array<i64: 1, 8, 16>}, {pipeline_mode = #tpu.pipeline_mode<synchronous>, transform_indices = @transform_1, window_bounds = array<i64: 32, 40>}, {pipeline_mode = #tpu.pipeline_mode<synchronous>, transform_indices = @transform_2, window_bounds = array<i64: 32, 1>}, {pipeline_mode = #tpu.pipeline_mode<synchronous>, transform_indices = @transform_3, window_bounds = array<i64: 6, 32, 96>}, {pipeline_mode = #tpu.pipeline_mode<synchronous>, transform_indices = @transform_4, window_bounds = array<i64: 6, 32, 1>}, {transform_indices = @transform_5, window_bounds = array<i64: 1, 96, 16>}]} {
    %c0 = arith.constant 0 : index
    %c0_0 = arith.constant 0 : index
    %c0_1 = arith.constant 0 : index
    %0 = vector.load %arg1[%c0, %c0_0, %c0_1] : memref<1x8x16xf32, #tpu.memory_space<vmem>>, vector<1x8x16xf32>
    %1 = vector.shape_cast %0 : vector<1x8x16xf32> to vector<8x16xf32>
    %c0_2 = arith.constant 0 : index
    %c0_3 = arith.constant 0 : index
    %2 = vector.load %arg2[%c0_2, %c0_3] : memref<32x40xf32, #tpu.memory_space<vmem>>, vector<32x40xf32>
    %c0_4 = arith.constant 0 : index
    %c0_5 = arith.constant 0 : index
    %3 = vector.load %arg3[%c0_4, %c0_5] : memref<32x1xf32, #tpu.memory_space<vmem>>, vector<32x1xf32>
    %4 = tpu.iota {dimensions = array<i32: 1>} : vector<1x16xi32>
    %c2_i32 = arith.constant 2 : i32
    %5 = tpu.dynamic_rotate %1 by %c2_i32 dim 1 : vector<8x16xf32>, i32 -> vector<8x16xf32>
    %c2_i32_6 = arith.constant 2 : i32
    %6 = vector.broadcast %c2_i32_6 : i32 to vector<1x16xi32>
    %7 = arith.cmpi sge, %4, %6 : vector<1x16xi32>
    %c18_i32 = arith.constant 18 : i32
    %8 = vector.broadcast %c18_i32 : i32 to vector<1x16xi32>
    %9 = arith.cmpi slt, %4, %8 : vector<1x16xi32>
    %10 = arith.andi %7, %9 : vector<1x16xi1>
    %cst = arith.constant 0.000000e+00 : f32
    %11 = vector.broadcast %cst : f32 to vector<8x16xf32>
    %12 = vector.shape_cast %10 : vector<1x16xi1> to vector<1x16xi1>
    %13 = vector.broadcast %12 : vector<1x16xi1> to vector<8x16xi1>
    %14 = arith.select %13, %5, %11 : vector<8x16xi1>, vector<8x16xf32>
    %c1_i32 = arith.constant 1 : i32
    %15 = tpu.dynamic_rotate %1 by %c1_i32 dim 1 : vector<8x16xf32>, i32 -> vector<8x16xf32>
    %c1_i32_7 = arith.constant 1 : i32
    %16 = vector.broadcast %c1_i32_7 : i32 to vector<1x16xi32>
    %17 = arith.cmpi sge, %4, %16 : vector<1x16xi32>
    %c17_i32 = arith.constant 17 : i32
    %18 = vector.broadcast %c17_i32 : i32 to vector<1x16xi32>
    %19 = arith.cmpi slt, %4, %18 : vector<1x16xi32>
    %20 = arith.andi %17, %19 : vector<1x16xi1>
    %cst_8 = arith.constant 0.000000e+00 : f32
    %21 = vector.broadcast %cst_8 : f32 to vector<8x16xf32>
    %22 = vector.shape_cast %20 : vector<1x16xi1> to vector<1x16xi1>
    %23 = vector.broadcast %22 : vector<1x16xi1> to vector<8x16xi1>
    %24 = arith.select %23, %15, %21 : vector<8x16xi1>, vector<8x16xf32>
    %c15_i32 = arith.constant 15 : i32
    %25 = tpu.dynamic_rotate %1 by %c15_i32 dim 1 : vector<8x16xf32>, i32 -> vector<8x16xf32>
    %c-1_i32 = arith.constant -1 : i32
    %26 = vector.broadcast %c-1_i32 : i32 to vector<1x16xi32>
    %27 = arith.cmpi sge, %4, %26 : vector<1x16xi32>
    %c15_i32_9 = arith.constant 15 : i32
    %28 = vector.broadcast %c15_i32_9 : i32 to vector<1x16xi32>
    %29 = arith.cmpi slt, %4, %28 : vector<1x16xi32>
    %30 = arith.andi %27, %29 : vector<1x16xi1>
    %cst_10 = arith.constant 0.000000e+00 : f32
    %31 = vector.broadcast %cst_10 : f32 to vector<8x16xf32>
    %32 = vector.shape_cast %30 : vector<1x16xi1> to vector<1x16xi1>
    %33 = vector.broadcast %32 : vector<1x16xi1> to vector<8x16xi1>
    %34 = arith.select %33, %25, %31 : vector<8x16xi1>, vector<8x16xf32>
    %c14_i32 = arith.constant 14 : i32
    %35 = tpu.dynamic_rotate %1 by %c14_i32 dim 1 : vector<8x16xf32>, i32 -> vector<8x16xf32>
    %c-2_i32 = arith.constant -2 : i32
    %36 = vector.broadcast %c-2_i32 : i32 to vector<1x16xi32>
    %37 = arith.cmpi sge, %4, %36 : vector<1x16xi32>
    %c14_i32_11 = arith.constant 14 : i32
    %38 = vector.broadcast %c14_i32_11 : i32 to vector<1x16xi32>
    %39 = arith.cmpi slt, %4, %38 : vector<1x16xi32>
    %40 = arith.andi %37, %39 : vector<1x16xi1>
    %cst_12 = arith.constant 0.000000e+00 : f32
    %41 = vector.broadcast %cst_12 : f32 to vector<8x16xf32>
    %42 = vector.shape_cast %40 : vector<1x16xi1> to vector<1x16xi1>
    %43 = vector.broadcast %42 : vector<1x16xi1> to vector<8x16xi1>
    %44 = arith.select %43, %35, %41 : vector<8x16xi1>, vector<8x16xf32>
    %45 = tpu.concatenate %14, %24, %1, %34, %44 in 0 : vector<8x16xf32>, vector<8x16xf32>, vector<8x16xf32>, vector<8x16xf32>, vector<8x16xf32> -> vector<40x16xf32>
    %cst_13 = arith.constant dense<0.000000e+00> : vector<32x16xf32>
    %46 = tpu.matmul %2, %45, %cst_13 {dimension_numbers = #tpu.dot_dimension_numbers<[1], [0], [0], [1], [0, 0, 1, 1], [], []>} : vector<32x40xf32>, vector<40x16xf32>, vector<32x16xf32> -> vector<32x16xf32>
    %47 = vector.broadcast %3 : vector<32x1xf32> to vector<32x16xf32>
    %48 = arith.addf %46, %47 : vector<32x16xf32>
    %cst_14 = arith.constant 0.000000e+00 : f32
    %49 = vector.broadcast %cst_14 : f32 to vector<32x16xf32>
    %50 = arith.cmpf oge, %48, %49 : vector<32x16xf32>
    %cst_15 = arith.constant 1.000000e-01 : f32
    %51 = vector.broadcast %cst_15 : f32 to vector<32x16xf32>
    %52 = arith.mulf %48, %51 : vector<32x16xf32>
    %53 = arith.select %50, %48, %52 : vector<32x16xi1>, vector<32x16xf32>
    %c0_16 = arith.constant 0 : index
    %c0_17 = arith.constant 0 : index
    %c0_18 = arith.constant 0 : index
    %54 = vector.load %arg4[%c0_16, %c0_17, %c0_18] : memref<6x32x96xf32, #tpu.memory_space<vmem>>, vector<1x32x96xf32>
    %55 = vector.shape_cast %54 : vector<1x32x96xf32> to vector<32x96xf32>
    %c0_19 = arith.constant 0 : index
    %c0_20 = arith.constant 0 : index
    %c0_21 = arith.constant 0 : index
    %56 = vector.load %arg5[%c0_19, %c0_20, %c0_21] : memref<6x32x1xf32, #tpu.memory_space<vmem>>, vector<1x32x1xf32>
    %57 = vector.shape_cast %56 : vector<1x32x1xf32> to vector<32x1xf32>
    %58 = tpu.iota {dimensions = array<i32: 1>} : vector<1x16xi32>
    %c1_i32_22 = arith.constant 1 : i32
    %59 = tpu.dynamic_rotate %53 by %c1_i32_22 dim 1 : vector<32x16xf32>, i32 -> vector<32x16xf32>
    %c1_i32_23 = arith.constant 1 : i32
    %60 = vector.broadcast %c1_i32_23 : i32 to vector<1x16xi32>
    %61 = arith.cmpi sge, %58, %60 : vector<1x16xi32>
    %c17_i32_24 = arith.constant 17 : i32
    %62 = vector.broadcast %c17_i32_24 : i32 to vector<1x16xi32>
    %63 = arith.cmpi slt, %58, %62 : vector<1x16xi32>
    %64 = arith.andi %61, %63 : vector<1x16xi1>
    %cst_25 = arith.constant 0.000000e+00 : f32
    %65 = vector.broadcast %cst_25 : f32 to vector<32x16xf32>
    %66 = vector.shape_cast %64 : vector<1x16xi1> to vector<1x16xi1>
    %67 = vector.broadcast %66 : vector<1x16xi1> to vector<32x16xi1>
    %68 = arith.select %67, %59, %65 : vector<32x16xi1>, vector<32x16xf32>
    %c15_i32_26 = arith.constant 15 : i32
    %69 = tpu.dynamic_rotate %53 by %c15_i32_26 dim 1 : vector<32x16xf32>, i32 -> vector<32x16xf32>
    %c-1_i32_27 = arith.constant -1 : i32
    %70 = vector.broadcast %c-1_i32_27 : i32 to vector<1x16xi32>
    %71 = arith.cmpi sge, %58, %70 : vector<1x16xi32>
    %c15_i32_28 = arith.constant 15 : i32
    %72 = vector.broadcast %c15_i32_28 : i32 to vector<1x16xi32>
    %73 = arith.cmpi slt, %58, %72 : vector<1x16xi32>
    %74 = arith.andi %71, %73 : vector<1x16xi1>
    %cst_29 = arith.constant 0.000000e+00 : f32
    %75 = vector.broadcast %cst_29 : f32 to vector<32x16xf32>
    %76 = vector.shape_cast %74 : vector<1x16xi1> to vector<1x16xi1>
    %77 = vector.broadcast %76 : vector<1x16xi1> to vector<32x16xi1>
    %78 = arith.select %77, %69, %75 : vector<32x16xi1>, vector<32x16xf32>
    %79 = tpu.concatenate %68, %53, %78 in 0 : vector<32x16xf32>, vector<32x16xf32>, vector<32x16xf32> -> vector<96x16xf32>
    %cst_30 = arith.constant dense<0.000000e+00> : vector<32x16xf32>
    %80 = tpu.matmul %55, %79, %cst_30 {dimension_numbers = #tpu.dot_dimension_numbers<[1], [0], [0], [1], [0, 0, 1, 1], [], []>} : vector<32x96xf32>, vector<96x16xf32>, vector<32x16xf32> -> vector<32x16xf32>
    %81 = vector.broadcast %57 : vector<32x1xf32> to vector<32x16xf32>
    %82 = arith.addf %80, %81 : vector<32x16xf32>
    %cst_31 = arith.constant 0.000000e+00 : f32
    %83 = vector.broadcast %cst_31 : f32 to vector<32x16xf32>
    %84 = arith.cmpf oge, %82, %83 : vector<32x16xf32>
    %cst_32 = arith.constant 1.000000e-01 : f32
    %85 = vector.broadcast %cst_32 : f32 to vector<32x16xf32>
    %86 = arith.mulf %82, %85 : vector<32x16xf32>
    %87 = arith.select %84, %82, %86 : vector<32x16xi1>, vector<32x16xf32>
    %c1 = arith.constant 1 : index
    %c0_33 = arith.constant 0 : index
    %c0_34 = arith.constant 0 : index
    %88 = vector.load %arg4[%c1, %c0_33, %c0_34] : memref<6x32x96xf32, #tpu.memory_space<vmem>>, vector<1x32x96xf32>
    %89 = vector.shape_cast %88 : vector<1x32x96xf32> to vector<32x96xf32>
    %c1_35 = arith.constant 1 : index
    %c0_36 = arith.constant 0 : index
    %c0_37 = arith.constant 0 : index
    %90 = vector.load %arg5[%c1_35, %c0_36, %c0_37] : memref<6x32x1xf32, #tpu.memory_space<vmem>>, vector<1x32x1xf32>
    %91 = vector.shape_cast %90 : vector<1x32x1xf32> to vector<32x1xf32>
    %92 = tpu.iota {dimensions = array<i32: 1>} : vector<1x16xi32>
    %c1_i32_38 = arith.constant 1 : i32
    %93 = tpu.dynamic_rotate %87 by %c1_i32_38 dim 1 : vector<32x16xf32>, i32 -> vector<32x16xf32>
    %c1_i32_39 = arith.constant 1 : i32
    %94 = vector.broadcast %c1_i32_39 : i32 to vector<1x16xi32>
    %95 = arith.cmpi sge, %92, %94 : vector<1x16xi32>
    %c17_i32_40 = arith.constant 17 : i32
    %96 = vector.broadcast %c17_i32_40 : i32 to vector<1x16xi32>
    %97 = arith.cmpi slt, %92, %96 : vector<1x16xi32>
    %98 = arith.andi %95, %97 : vector<1x16xi1>
    %cst_41 = arith.constant 0.000000e+00 : f32
    %99 = vector.broadcast %cst_41 : f32 to vector<32x16xf32>
    %100 = vector.shape_cast %98 : vector<1x16xi1> to vector<1x16xi1>
    %101 = vector.broadcast %100 : vector<1x16xi1> to vector<32x16xi1>
    %102 = arith.select %101, %93, %99 : vector<32x16xi1>, vector<32x16xf32>
    %c15_i32_42 = arith.constant 15 : i32
    %103 = tpu.dynamic_rotate %87 by %c15_i32_42 dim 1 : vector<32x16xf32>, i32 -> vector<32x16xf32>
    %c-1_i32_43 = arith.constant -1 : i32
    %104 = vector.broadcast %c-1_i32_43 : i32 to vector<1x16xi32>
    %105 = arith.cmpi sge, %92, %104 : vector<1x16xi32>
    %c15_i32_44 = arith.constant 15 : i32
    %106 = vector.broadcast %c15_i32_44 : i32 to vector<1x16xi32>
    %107 = arith.cmpi slt, %92, %106 : vector<1x16xi32>
    %108 = arith.andi %105, %107 : vector<1x16xi1>
    %cst_45 = arith.constant 0.000000e+00 : f32
    %109 = vector.broadcast %cst_45 : f32 to vector<32x16xf32>
    %110 = vector.shape_cast %108 : vector<1x16xi1> to vector<1x16xi1>
    %111 = vector.broadcast %110 : vector<1x16xi1> to vector<32x16xi1>
    %112 = arith.select %111, %103, %109 : vector<32x16xi1>, vector<32x16xf32>
    %113 = tpu.concatenate %102, %87, %112 in 0 : vector<32x16xf32>, vector<32x16xf32>, vector<32x16xf32> -> vector<96x16xf32>
    %cst_46 = arith.constant dense<0.000000e+00> : vector<32x16xf32>
    %114 = tpu.matmul %89, %113, %cst_46 {dimension_numbers = #tpu.dot_dimension_numbers<[1], [0], [0], [1], [0, 0, 1, 1], [], []>} : vector<32x96xf32>, vector<96x16xf32>, vector<32x16xf32> -> vector<32x16xf32>
    %115 = vector.broadcast %91 : vector<32x1xf32> to vector<32x16xf32>
    %116 = arith.addf %114, %115 : vector<32x16xf32>
    %cst_47 = arith.constant 0.000000e+00 : f32
    %117 = vector.broadcast %cst_47 : f32 to vector<32x16xf32>
    %118 = arith.cmpf oge, %116, %117 : vector<32x16xf32>
    %cst_48 = arith.constant 1.000000e-01 : f32
    %119 = vector.broadcast %cst_48 : f32 to vector<32x16xf32>
    %120 = arith.mulf %116, %119 : vector<32x16xf32>
    %121 = arith.select %118, %116, %120 : vector<32x16xi1>, vector<32x16xf32>
    %122 = arith.addf %53, %121 : vector<32x16xf32>
    %c2 = arith.constant 2 : index
    %c0_49 = arith.constant 0 : index
    %c0_50 = arith.constant 0 : index
    %123 = vector.load %arg4[%c2, %c0_49, %c0_50] : memref<6x32x96xf32, #tpu.memory_space<vmem>>, vector<1x32x96xf32>
    %124 = vector.shape_cast %123 : vector<1x32x96xf32> to vector<32x96xf32>
    %c2_51 = arith.constant 2 : index
    %c0_52 = arith.constant 0 : index
    %c0_53 = arith.constant 0 : index
    %125 = vector.load %arg5[%c2_51, %c0_52, %c0_53] : memref<6x32x1xf32, #tpu.memory_space<vmem>>, vector<1x32x1xf32>
    %126 = vector.shape_cast %125 : vector<1x32x1xf32> to vector<32x1xf32>
    %127 = tpu.iota {dimensions = array<i32: 1>} : vector<1x16xi32>
    %c1_i32_54 = arith.constant 1 : i32
    %128 = tpu.dynamic_rotate %122 by %c1_i32_54 dim 1 : vector<32x16xf32>, i32 -> vector<32x16xf32>
    %c1_i32_55 = arith.constant 1 : i32
    %129 = vector.broadcast %c1_i32_55 : i32 to vector<1x16xi32>
    %130 = arith.cmpi sge, %127, %129 : vector<1x16xi32>
    %c17_i32_56 = arith.constant 17 : i32
    %131 = vector.broadcast %c17_i32_56 : i32 to vector<1x16xi32>
    %132 = arith.cmpi slt, %127, %131 : vector<1x16xi32>
    %133 = arith.andi %130, %132 : vector<1x16xi1>
    %cst_57 = arith.constant 0.000000e+00 : f32
    %134 = vector.broadcast %cst_57 : f32 to vector<32x16xf32>
    %135 = vector.shape_cast %133 : vector<1x16xi1> to vector<1x16xi1>
    %136 = vector.broadcast %135 : vector<1x16xi1> to vector<32x16xi1>
    %137 = arith.select %136, %128, %134 : vector<32x16xi1>, vector<32x16xf32>
    %c15_i32_58 = arith.constant 15 : i32
    %138 = tpu.dynamic_rotate %122 by %c15_i32_58 dim 1 : vector<32x16xf32>, i32 -> vector<32x16xf32>
    %c-1_i32_59 = arith.constant -1 : i32
    %139 = vector.broadcast %c-1_i32_59 : i32 to vector<1x16xi32>
    %140 = arith.cmpi sge, %127, %139 : vector<1x16xi32>
    %c15_i32_60 = arith.constant 15 : i32
    %141 = vector.broadcast %c15_i32_60 : i32 to vector<1x16xi32>
    %142 = arith.cmpi slt, %127, %141 : vector<1x16xi32>
    %143 = arith.andi %140, %142 : vector<1x16xi1>
    %cst_61 = arith.constant 0.000000e+00 : f32
    %144 = vector.broadcast %cst_61 : f32 to vector<32x16xf32>
    %145 = vector.shape_cast %143 : vector<1x16xi1> to vector<1x16xi1>
    %146 = vector.broadcast %145 : vector<1x16xi1> to vector<32x16xi1>
    %147 = arith.select %146, %138, %144 : vector<32x16xi1>, vector<32x16xf32>
    %148 = tpu.concatenate %137, %122, %147 in 0 : vector<32x16xf32>, vector<32x16xf32>, vector<32x16xf32> -> vector<96x16xf32>
    %cst_62 = arith.constant dense<0.000000e+00> : vector<32x16xf32>
    %149 = tpu.matmul %124, %148, %cst_62 {dimension_numbers = #tpu.dot_dimension_numbers<[1], [0], [0], [1], [0, 0, 1, 1], [], []>} : vector<32x96xf32>, vector<96x16xf32>, vector<32x16xf32> -> vector<32x16xf32>
    %150 = vector.broadcast %126 : vector<32x1xf32> to vector<32x16xf32>
    %151 = arith.addf %149, %150 : vector<32x16xf32>
    %cst_63 = arith.constant 0.000000e+00 : f32
    %152 = vector.broadcast %cst_63 : f32 to vector<32x16xf32>
    %153 = arith.cmpf oge, %151, %152 : vector<32x16xf32>
    %cst_64 = arith.constant 1.000000e-01 : f32
    %154 = vector.broadcast %cst_64 : f32 to vector<32x16xf32>
    %155 = arith.mulf %151, %154 : vector<32x16xf32>
    %156 = arith.select %153, %151, %155 : vector<32x16xi1>, vector<32x16xf32>
    %c3 = arith.constant 3 : index
    %c0_65 = arith.constant 0 : index
    %c0_66 = arith.constant 0 : index
    %157 = vector.load %arg4[%c3, %c0_65, %c0_66] : memref<6x32x96xf32, #tpu.memory_space<vmem>>, vector<1x32x96xf32>
    %158 = vector.shape_cast %157 : vector<1x32x96xf32> to vector<32x96xf32>
    %c3_67 = arith.constant 3 : index
    %c0_68 = arith.constant 0 : index
    %c0_69 = arith.constant 0 : index
    %159 = vector.load %arg5[%c3_67, %c0_68, %c0_69] : memref<6x32x1xf32, #tpu.memory_space<vmem>>, vector<1x32x1xf32>
    %160 = vector.shape_cast %159 : vector<1x32x1xf32> to vector<32x1xf32>
    %161 = tpu.iota {dimensions = array<i32: 1>} : vector<1x16xi32>
    %c1_i32_70 = arith.constant 1 : i32
    %162 = tpu.dynamic_rotate %156 by %c1_i32_70 dim 1 : vector<32x16xf32>, i32 -> vector<32x16xf32>
    %c1_i32_71 = arith.constant 1 : i32
    %163 = vector.broadcast %c1_i32_71 : i32 to vector<1x16xi32>
    %164 = arith.cmpi sge, %161, %163 : vector<1x16xi32>
    %c17_i32_72 = arith.constant 17 : i32
    %165 = vector.broadcast %c17_i32_72 : i32 to vector<1x16xi32>
    %166 = arith.cmpi slt, %161, %165 : vector<1x16xi32>
    %167 = arith.andi %164, %166 : vector<1x16xi1>
    %cst_73 = arith.constant 0.000000e+00 : f32
    %168 = vector.broadcast %cst_73 : f32 to vector<32x16xf32>
    %169 = vector.shape_cast %167 : vector<1x16xi1> to vector<1x16xi1>
    %170 = vector.broadcast %169 : vector<1x16xi1> to vector<32x16xi1>
    %171 = arith.select %170, %162, %168 : vector<32x16xi1>, vector<32x16xf32>
    %c15_i32_74 = arith.constant 15 : i32
    %172 = tpu.dynamic_rotate %156 by %c15_i32_74 dim 1 : vector<32x16xf32>, i32 -> vector<32x16xf32>
    %c-1_i32_75 = arith.constant -1 : i32
    %173 = vector.broadcast %c-1_i32_75 : i32 to vector<1x16xi32>
    %174 = arith.cmpi sge, %161, %173 : vector<1x16xi32>
    %c15_i32_76 = arith.constant 15 : i32
    %175 = vector.broadcast %c15_i32_76 : i32 to vector<1x16xi32>
    %176 = arith.cmpi slt, %161, %175 : vector<1x16xi32>
    %177 = arith.andi %174, %176 : vector<1x16xi1>
    %cst_77 = arith.constant 0.000000e+00 : f32
    %178 = vector.broadcast %cst_77 : f32 to vector<32x16xf32>
    %179 = vector.shape_cast %177 : vector<1x16xi1> to vector<1x16xi1>
    %180 = vector.broadcast %179 : vector<1x16xi1> to vector<32x16xi1>
    %181 = arith.select %180, %172, %178 : vector<32x16xi1>, vector<32x16xf32>
    %182 = tpu.concatenate %171, %156, %181 in 0 : vector<32x16xf32>, vector<32x16xf32>, vector<32x16xf32> -> vector<96x16xf32>
    %cst_78 = arith.constant dense<0.000000e+00> : vector<32x16xf32>
    %183 = tpu.matmul %158, %182, %cst_78 {dimension_numbers = #tpu.dot_dimension_numbers<[1], [0], [0], [1], [0, 0, 1, 1], [], []>} : vector<32x96xf32>, vector<96x16xf32>, vector<32x16xf32> -> vector<32x16xf32>
    %184 = vector.broadcast %160 : vector<32x1xf32> to vector<32x16xf32>
    %185 = arith.addf %183, %184 : vector<32x16xf32>
    %cst_79 = arith.constant 0.000000e+00 : f32
    %186 = vector.broadcast %cst_79 : f32 to vector<32x16xf32>
    %187 = arith.cmpf oge, %185, %186 : vector<32x16xf32>
    %cst_80 = arith.constant 1.000000e-01 : f32
    %188 = vector.broadcast %cst_80 : f32 to vector<32x16xf32>
    %189 = arith.mulf %185, %188 : vector<32x16xf32>
    %190 = arith.select %187, %185, %189 : vector<32x16xi1>, vector<32x16xf32>
    %191 = arith.addf %122, %190 : vector<32x16xf32>
    %c4 = arith.constant 4 : index
    %c0_81 = arith.constant 0 : index
    %c0_82 = arith.constant 0 : index
    %192 = vector.load %arg4[%c4, %c0_81, %c0_82] : memref<6x32x96xf32, #tpu.memory_space<vmem>>, vector<1x32x96xf32>
    %193 = vector.shape_cast %192 : vector<1x32x96xf32> to vector<32x96xf32>
    %c4_83 = arith.constant 4 : index
    %c0_84 = arith.constant 0 : index
    %c0_85 = arith.constant 0 : index
    %194 = vector.load %arg5[%c4_83, %c0_84, %c0_85] : memref<6x32x1xf32, #tpu.memory_space<vmem>>, vector<1x32x1xf32>
    %195 = vector.shape_cast %194 : vector<1x32x1xf32> to vector<32x1xf32>
    %196 = tpu.iota {dimensions = array<i32: 1>} : vector<1x16xi32>
    %c1_i32_86 = arith.constant 1 : i32
    %197 = tpu.dynamic_rotate %191 by %c1_i32_86 dim 1 : vector<32x16xf32>, i32 -> vector<32x16xf32>
    %c1_i32_87 = arith.constant 1 : i32
    %198 = vector.broadcast %c1_i32_87 : i32 to vector<1x16xi32>
    %199 = arith.cmpi sge, %196, %198 : vector<1x16xi32>
    %c17_i32_88 = arith.constant 17 : i32
    %200 = vector.broadcast %c17_i32_88 : i32 to vector<1x16xi32>
    %201 = arith.cmpi slt, %196, %200 : vector<1x16xi32>
    %202 = arith.andi %199, %201 : vector<1x16xi1>
    %cst_89 = arith.constant 0.000000e+00 : f32
    %203 = vector.broadcast %cst_89 : f32 to vector<32x16xf32>
    %204 = vector.shape_cast %202 : vector<1x16xi1> to vector<1x16xi1>
    %205 = vector.broadcast %204 : vector<1x16xi1> to vector<32x16xi1>
    %206 = arith.select %205, %197, %203 : vector<32x16xi1>, vector<32x16xf32>
    %c15_i32_90 = arith.constant 15 : i32
    %207 = tpu.dynamic_rotate %191 by %c15_i32_90 dim 1 : vector<32x16xf32>, i32 -> vector<32x16xf32>
    %c-1_i32_91 = arith.constant -1 : i32
    %208 = vector.broadcast %c-1_i32_91 : i32 to vector<1x16xi32>
    %209 = arith.cmpi sge, %196, %208 : vector<1x16xi32>
    %c15_i32_92 = arith.constant 15 : i32
    %210 = vector.broadcast %c15_i32_92 : i32 to vector<1x16xi32>
    %211 = arith.cmpi slt, %196, %210 : vector<1x16xi32>
    %212 = arith.andi %209, %211 : vector<1x16xi1>
    %cst_93 = arith.constant 0.000000e+00 : f32
    %213 = vector.broadcast %cst_93 : f32 to vector<32x16xf32>
    %214 = vector.shape_cast %212 : vector<1x16xi1> to vector<1x16xi1>
    %215 = vector.broadcast %214 : vector<1x16xi1> to vector<32x16xi1>
    %216 = arith.select %215, %207, %213 : vector<32x16xi1>, vector<32x16xf32>
    %217 = tpu.concatenate %206, %191, %216 in 0 : vector<32x16xf32>, vector<32x16xf32>, vector<32x16xf32> -> vector<96x16xf32>
    %cst_94 = arith.constant dense<0.000000e+00> : vector<32x16xf32>
    %218 = tpu.matmul %193, %217, %cst_94 {dimension_numbers = #tpu.dot_dimension_numbers<[1], [0], [0], [1], [0, 0, 1, 1], [], []>} : vector<32x96xf32>, vector<96x16xf32>, vector<32x16xf32> -> vector<32x16xf32>
    %219 = vector.broadcast %195 : vector<32x1xf32> to vector<32x16xf32>
    %220 = arith.addf %218, %219 : vector<32x16xf32>
    %cst_95 = arith.constant 0.000000e+00 : f32
    %221 = vector.broadcast %cst_95 : f32 to vector<32x16xf32>
    %222 = arith.cmpf oge, %220, %221 : vector<32x16xf32>
    %cst_96 = arith.constant 1.000000e-01 : f32
    %223 = vector.broadcast %cst_96 : f32 to vector<32x16xf32>
    %224 = arith.mulf %220, %223 : vector<32x16xf32>
    %225 = arith.select %222, %220, %224 : vector<32x16xi1>, vector<32x16xf32>
    %c5 = arith.constant 5 : index
    %c0_97 = arith.constant 0 : index
    %c0_98 = arith.constant 0 : index
    %226 = vector.load %arg4[%c5, %c0_97, %c0_98] : memref<6x32x96xf32, #tpu.memory_space<vmem>>, vector<1x32x96xf32>
    %227 = vector.shape_cast %226 : vector<1x32x96xf32> to vector<32x96xf32>
    %c5_99 = arith.constant 5 : index
    %c0_100 = arith.constant 0 : index
    %c0_101 = arith.constant 0 : index
    %228 = vector.load %arg5[%c5_99, %c0_100, %c0_101] : memref<6x32x1xf32, #tpu.memory_space<vmem>>, vector<1x32x1xf32>
    %229 = vector.shape_cast %228 : vector<1x32x1xf32> to vector<32x1xf32>
    %230 = tpu.iota {dimensions = array<i32: 1>} : vector<1x16xi32>
    %c1_i32_102 = arith.constant 1 : i32
    %231 = tpu.dynamic_rotate %225 by %c1_i32_102 dim 1 : vector<32x16xf32>, i32 -> vector<32x16xf32>
    %c1_i32_103 = arith.constant 1 : i32
    %232 = vector.broadcast %c1_i32_103 : i32 to vector<1x16xi32>
    %233 = arith.cmpi sge, %230, %232 : vector<1x16xi32>
    %c17_i32_104 = arith.constant 17 : i32
    %234 = vector.broadcast %c17_i32_104 : i32 to vector<1x16xi32>
    %235 = arith.cmpi slt, %230, %234 : vector<1x16xi32>
    %236 = arith.andi %233, %235 : vector<1x16xi1>
    %cst_105 = arith.constant 0.000000e+00 : f32
    %237 = vector.broadcast %cst_105 : f32 to vector<32x16xf32>
    %238 = vector.shape_cast %236 : vector<1x16xi1> to vector<1x16xi1>
    %239 = vector.broadcast %238 : vector<1x16xi1> to vector<32x16xi1>
    %240 = arith.select %239, %231, %237 : vector<32x16xi1>, vector<32x16xf32>
    %c15_i32_106 = arith.constant 15 : i32
    %241 = tpu.dynamic_rotate %225 by %c15_i32_106 dim 1 : vector<32x16xf32>, i32 -> vector<32x16xf32>
    %c-1_i32_107 = arith.constant -1 : i32
    %242 = vector.broadcast %c-1_i32_107 : i32 to vector<1x16xi32>
    %243 = arith.cmpi sge, %230, %242 : vector<1x16xi32>
    %c15_i32_108 = arith.constant 15 : i32
    %244 = vector.broadcast %c15_i32_108 : i32 to vector<1x16xi32>
    %245 = arith.cmpi slt, %230, %244 : vector<1x16xi32>
    %246 = arith.andi %243, %245 : vector<1x16xi1>
    %cst_109 = arith.constant 0.000000e+00 : f32
    %247 = vector.broadcast %cst_109 : f32 to vector<32x16xf32>
    %248 = vector.shape_cast %246 : vector<1x16xi1> to vector<1x16xi1>
    %249 = vector.broadcast %248 : vector<1x16xi1> to vector<32x16xi1>
    %250 = arith.select %249, %241, %247 : vector<32x16xi1>, vector<32x16xf32>
    %251 = tpu.concatenate %240, %225, %250 in 0 : vector<32x16xf32>, vector<32x16xf32>, vector<32x16xf32> -> vector<96x16xf32>
    %cst_110 = arith.constant dense<0.000000e+00> : vector<32x16xf32>
    %252 = tpu.matmul %227, %251, %cst_110 {dimension_numbers = #tpu.dot_dimension_numbers<[1], [0], [0], [1], [0, 0, 1, 1], [], []>} : vector<32x96xf32>, vector<96x16xf32>, vector<32x16xf32> -> vector<32x16xf32>
    %253 = vector.broadcast %229 : vector<32x1xf32> to vector<32x16xf32>
    %254 = arith.addf %252, %253 : vector<32x16xf32>
    %cst_111 = arith.constant 0.000000e+00 : f32
    %255 = vector.broadcast %cst_111 : f32 to vector<32x16xf32>
    %256 = arith.cmpf oge, %254, %255 : vector<32x16xf32>
    %cst_112 = arith.constant 1.000000e-01 : f32
    %257 = vector.broadcast %cst_112 : f32 to vector<32x16xf32>
    %258 = arith.mulf %254, %257 : vector<32x16xf32>
    %259 = arith.select %256, %254, %258 : vector<32x16xi1>, vector<32x16xf32>
    %260 = arith.addf %191, %259 : vector<32x16xf32>
    %261 = tpu.iota {dimensions = array<i32: 1>} : vector<1x16xi32>
    %c1_i32_113 = arith.constant 1 : i32
    %262 = tpu.dynamic_rotate %260 by %c1_i32_113 dim 1 : vector<32x16xf32>, i32 -> vector<32x16xf32>
    %c1_i32_114 = arith.constant 1 : i32
    %263 = vector.broadcast %c1_i32_114 : i32 to vector<1x16xi32>
    %264 = arith.cmpi sge, %261, %263 : vector<1x16xi32>
    %c17_i32_115 = arith.constant 17 : i32
    %265 = vector.broadcast %c17_i32_115 : i32 to vector<1x16xi32>
    %266 = arith.cmpi slt, %261, %265 : vector<1x16xi32>
    %267 = arith.andi %264, %266 : vector<1x16xi1>
    %cst_116 = arith.constant 0.000000e+00 : f32
    %268 = vector.broadcast %cst_116 : f32 to vector<32x16xf32>
    %269 = vector.shape_cast %267 : vector<1x16xi1> to vector<1x16xi1>
    %270 = vector.broadcast %269 : vector<1x16xi1> to vector<32x16xi1>
    %271 = arith.select %270, %262, %268 : vector<32x16xi1>, vector<32x16xf32>
    %c15_i32_117 = arith.constant 15 : i32
    %272 = tpu.dynamic_rotate %260 by %c15_i32_117 dim 1 : vector<32x16xf32>, i32 -> vector<32x16xf32>
    %c-1_i32_118 = arith.constant -1 : i32
    %273 = vector.broadcast %c-1_i32_118 : i32 to vector<1x16xi32>
    %274 = arith.cmpi sge, %261, %273 : vector<1x16xi32>
    %c15_i32_119 = arith.constant 15 : i32
    %275 = vector.broadcast %c15_i32_119 : i32 to vector<1x16xi32>
    %276 = arith.cmpi slt, %261, %275 : vector<1x16xi32>
    %277 = arith.andi %274, %276 : vector<1x16xi1>
    %cst_120 = arith.constant 0.000000e+00 : f32
    %278 = vector.broadcast %cst_120 : f32 to vector<32x16xf32>
    %279 = vector.shape_cast %277 : vector<1x16xi1> to vector<1x16xi1>
    %280 = vector.broadcast %279 : vector<1x16xi1> to vector<32x16xi1>
    %281 = arith.select %280, %272, %278 : vector<32x16xi1>, vector<32x16xf32>
    %282 = tpu.concatenate %271, %260, %281 in 0 : vector<32x16xf32>, vector<32x16xf32>, vector<32x16xf32> -> vector<96x16xf32>
    %c0_121 = arith.constant 0 : index
    %c0_122 = arith.constant 0 : index
    %c0_123 = arith.constant 0 : index
    %283 = vector.load %arg6[%c0_121, %c0_122, %c0_123] : memref<1x96x16xf32, #tpu.memory_space<vmem>>, vector<1x96x16xf32>
    %284 = vector.shape_cast %283 : vector<1x96x16xf32> to vector<96x16xf32>
    %285 = vector.shape_cast %282 : vector<96x16xf32> to vector<1x96x16xf32>
    tpu.vector_store %arg6[%c0_121, %c0_122, %c0_123], %285 {strides = array<i32>} : memref<1x96x16xf32, #tpu.memory_space<vmem>>, vector<1x96x16xf32>,
    return
  }
  func.func @transform_0(%arg0: i32) -> (i32, i32, i32) {
    %c0_i32 = arith.constant 0 : i32
    %c0_i32_0 = arith.constant 0 : i32
    %c0_i32_1 = arith.constant 0 : i32
    return %arg0, %c0_i32, %c0_i32_0 : i32, i32, i32
  }
  func.func @transform_1(%arg0: i32) -> (i32, i32) {
    %c0_i32 = arith.constant 0 : i32
    %c0_i32_0 = arith.constant 0 : i32
    %c0_i32_1 = arith.constant 0 : i32
    return %c0_i32, %c0_i32_0 : i32, i32
  }
  func.func @transform_2(%arg0: i32) -> (i32, i32) {
    %c0_i32 = arith.constant 0 : i32
    %c0_i32_0 = arith.constant 0 : i32
    %c0_i32_1 = arith.constant 0 : i32
    return %c0_i32, %c0_i32_0 : i32, i32
  }
  func.func @transform_3(%arg0: i32) -> (i32, i32, i32) {
    %c0_i32 = arith.constant 0 : i32
    %c0_i32_0 = arith.constant 0 : i32
    %c0_i32_1 = arith.constant 0 : i32
    %c0_i32_2 = arith.constant 0 : i32
    return %c0_i32, %c0_i32_0, %c0_i32_1 : i32, i32, i32
  }
  func.func @transform_4(%arg0: i32) -> (i32, i32, i32) {
    %c0_i32 = arith.constant 0 : i32
    %c0_i32_0 = arith.constant 0 : i32
    %c0_i32_1 = arith.constant 0 : i32
    %c0_i32_2 = arith.constant 0 : i32
    return %c0_i32, %c0_i32_0, %c0_i32_1 : i32, i32, i32
  }
  func.func @transform_5(%arg0: i32) -> (i32, i32, i32) {
    %c0_i32 = arith.constant 0 : i32
    %c0_i32_0 = arith.constant 0 : i32
    %c0_i32_1 = arith.constant 0 : i32
    return %arg0, %c0_i32, %c0_i32_0 : i32, i32, i32
  }
}

</mosaic_0001>

<bundles_post_ra>
// kernel: tpu_custom_call.1
= control target key start
LH: loop header
LB: loop body
LE: loop exit
PB: predicated region body
PF: predicated region fallthrough
CT: control target
= control target key end

     0   :  { %10 = vsyncpa [#allocation3], 0  ;;  %s3193_s0 = inlined_call_operand.hbm [shape: f32[2,8,16], index: 0, kind: input, shape index: {}]   ;;  %s3194_s1 = inlined_call_operand.vmem [shape: f32[32,40], index: 1, kind: input, shape index: {}]   ;;  %s3195_s2 = inlined_call_operand.vmem [shape: f32[32,1], index: 2, kind: input, shape index: {}]   ;;  %s3196_s3 = inlined_call_operand.vmem [shape: f32[6,32,96], index: 3, kind: input, shape index: {}]   ;;  %s3197_s4 = inlined_call_operand.vmem [shape: f32[6,32,1], index: 4, kind: input, shape index: {}]   ;;  %s3198_s5 = inlined_call_operand.vmem [shape: f32[2,96,16], index: 5, kind: output, shape index: {}]  }
   0x1   :  { %12 = vsyncpa [#allocation3 + $0x1], 0  ;;  %s2352_s18 = smov 0   ;;  %s2354_s19 = smov 0  }
   0x2   :  { %s2356_s20 = smov 0   ;;  %s2358_s21 = smov 0  }
   0x3 LB: > { %s2371_s22 = sadd.s32 4294967295, %s2313_s21   ;;  %s2374_s23 = sadd.s32 1, %s2313_s21   ;;  %s2313_s21 = sphi %s2358_s21, %s3210_s21   ;;  %s2309_s20 = sphi %s2356_s20, %s3209_s20   ;;  %s2305_s19 = sphi %s2354_s19, %s3208_s19   ;;  %s2301_s18 = sphi %s2352_s18, %s3207_s18  }
   0x4   : > { %s22_s24 = ssub.s32 %s2313_s21, %s2374_s23  ;;  %s25_s25 = sadd.s32 1, %s2309_s20 }
   0x5   : > { %p23_p0 = scmp.eq.s32.totalorder %s22_s24, 0  ;;  %p32_p1 = scmp.ne.s32.totalorder %s2309_s20, %s2305_s19 }
   0x6   : > { %p33_p2 = scmp.eq.s32.totalorder %s2313_s21, 0  ;;  %p38_p3 = scmp.ne.s32.totalorder %s2305_s19, %s2301_s18 }
   0x7   : > { %s2384_s26 = scalar_select %p23_p0, %s2309_s20, %s25_s25  }
   0x8   : > { %p34_p4 = por %p33_p2, %p32_p1  ;;  %p39_p5 = scmp.eq.s32.totalorder %s2371_s22, 0 }
   0x9   : > { %p2210_p6 = scmp.lt.s32.totalorder %s2313_s21, 2  ;;  %s184_s28 = sand.u32 1, %s2309_s20  }
   0xa   : > { %p2388_p7 = por %p39_p5, %p38_p3  ;;  %s1775_s29 = sshll.u32 %s184_s28, 3 }
   0xb   : > { %s1776_s30 = sshll.u32 %s2313_s21, 7  ;;  %s188_s9 = scalar_lea.vmem [#allocation2], %s1775_s29 }
   0xc   : > { %s3200_s27 = scalar_select %p2388_p7, 1, 0 }
   0xd   : > { %s2397_s8 = scalar_lea.hbm %s3193_s0, %s1776_s30  ;;  %s195_s10 = sshll.u32 %s188_s9, 4  ;;  %s2399_s10 = int_to_ptr.vmem [resolvable:$true] %s195_s10 }
   0xe   : > { %p2401_p8 = pnand %p2210_p6, %p34_p4  ;;  %s185_s12 = scalar_lea.sflag [#allocation3], %s184_s28 }
   0xf   : > { %s2251_s13 = scalar_lea.hbm %s2397_s8, 128  ;;  %s2256_s16 = scalar_lea.hbm %s3193_s0, 256 }
  0x10   : > { %p2252_p11 = scmp.ne.s32.totalorder %s2397_s8, %s2251_s13  ;;  %p2253_p12 = pneg %p2401_p8 }
  0x11   : > { %p2257_p1 = scmp.lt.s32.totalorder %s2397_s8, %s3193_s0  ;;  %p2258_p2 = scmp.lt.s32.totalorder %s2256_s16, %s2251_s13 }
  0x12   : > { %p2254_p13 = pnand %p2253_p12, %p2252_p11 }
  0x13   : > { %p2259_p3 = por %p2258_p2, %p2257_p1 }
  0x14   : > { %p2255_p0 = pneg %p2254_p13 }
  0x16   : > { %p2260_p4 = pnand %p2259_p3, %p2255_p0 }
  0x18   : > { %2263 = shalt.err (!%p2260_p4)
}
  0x19   : > { %s2264_s24 = scalar_lea.vmem %s2399_s10, 128  ;;  %s2315_s25 = smov [#allocation2]  }
  0x1a   : > { %p2265_p5 = scmp.ne.s32.totalorder %s2399_s10, %s2264_s24  ;;  %s2269_s28 = sshll.u32 %s2315_s25, 4  ;;  %s2270_s28 = int_to_ptr.vmem [resolvable:$false] %s2269_s28 }
  0x1b   : > { %s2271_s29 = scalar_lea.vmem %s2270_s28, 256  ;;  %p2272_p13 = scmp.lt.s32.totalorder %s2399_s10, %s2270_s28 }
  0x1c   : > { %p2267_p6 = pnand %p2265_p5, %p2253_p12  ;;  %p2273_p9 = scmp.lt.s32.totalorder %s2271_s29, %s2264_s24 }
  0x1e   : > { %p2268_p11 = pneg %p2267_p6  ;;  %p2274_p10 = por %p2273_p9, %p2272_p13 }
  0x20   : > { %p2275_p7 = pnand %p2274_p10, %p2268_p11 }
  0x22   : > { %2278 = shalt.err (!%p2275_p7)
}
  0x23   : > { %2209 = dma.hbm_to_vmem [thread:$0]  (!%p2401_p8), %s2397_s8, 128, %s2399_s10, %s185_s12  }
  0x24   : > { %p3202_p0 = scmp.lt.s32.totalorder %s2313_s21, 3  ;;  %p3203_p1 = scmp.ge.s32.totalorder %s2313_s21, 1 }
  0x26   : > { %p201_p12 = pnand %p3203_p1, %p3202_p0 }
  0x27   : > { %s206_s30 = sand.u32 (!%p201_p12), 1, %s2305_s19   ;;  %p3204_p9 = scmp.ne.s32.totalorder (!%p201_p12), %s3200_s27, 0 }
  0x28   : > { %204 = sbr.rel (%p201_p12) target bundleno = 4411 (0x113b), region = 40  ;;  %s1778_s6 = sshll.u32 (!%p201_p12), %s206_s30, 3 }
  0x29   : > { %s207_s7 = scalar_lea.sflag (!%p201_p12), [#allocation3], %s206_s30  ;;  %s210_s9 = scalar_lea.vmem (!%p201_p12), [#allocation2], %s1778_s6 }
  0x2d   : > { %2296 = dma.done.wait (%p3204_p9), %s207_s7, 128  }
  0x2e   : > { %2298 = vsyncadd (%p3204_p9), %s207_s7, 4294967168  ;;  %v242_v0 = vld [vmem:[%s210_s9] sm:$0xff]  ;;  %s2316_s11 = smov 16   ;;  %vm253_vm0 = vcmask 1047680   ;;  %vm317_vm1 = vcmask 326656   ;;  %s2317_s27 = smov 113   ;;  %v251_v11 = vlaneseq }
  0x2f   : > { %254 = vrot.lane.b32.xlu0 %v242_v0, %s2316_s11  ;;  %v243_v3 = vld [vmem:[%s3194_s1] sm:$0xff]  ;;  %s2318_s10 = smov 126   ;;  %v250_v6 = vld [vmem:[%s3195_s2 + $0x18] sm:$0xff]  ;;  %s2319_s14 = smov 127   ;;  %v2320_v7 = vmov 0   ;;  %v249_v9 = vld [vmem:[%s3195_s2 + $0x10] sm:$0xff] }
  0x30   : > { %2017 = vmatprep.mubr.msk.f32.mxu0 %vm317_vm1, %v243_v3  ;;  %2249 = vset.pattern.permute.xlu0 %v2320_v7  ;;  %v247_v8 = vld [vmem:[%s3195_s2] sm:$0xff]  ;;  %s2321_s17 = smov 114   ;;  %v248_v10 = vld [vmem:[%s3195_s2 + $0x8] sm:$0xff]  ;;  %v2456_v12 = vand.u32 127, %v251_v11  ;;  %v245_v19 = vld [vmem:[%s3194_s1 + $0x10] sm:$0xff]  ;;  %vm515_vm14 = vcmask 785408  }
  0x31   : > { %2250 = vset.pattern.permute.xlu1 %v2320_v7  ;;  %v244_v18 = vld [vmem:[%s3194_s1 + $0x8] sm:$0xff]  ;;  %v246_v20 = vld [vmem:[%s3194_s1 + $0x18] sm:$0xff]  ;;  %v427_v57 = vld [vmem:[%s3196_s3] sm:$0xff]  ;;  %p237_p7 = scmp.lt.s32.totalorder %s2371_s22, 1 }
  0x32   : > { %vm289_vm2 = vcmp.lt.s32.totalorder %v2456_v12, 14  ;;  %vm280_vm3 = vcmp.lt.s32.totalorder %v2456_v12, 15  ;;  %vm270_vm4 = vcmp.ge.s32.totalorder %v2456_v12, 1  ;;  %vm271_vm5 = vcmp.lt.s32.totalorder %v2456_v12, 17  ;;  %2047 = vmatprep.mubr.msk.f32.mxu1 %vm515_vm14, %v427_v57  ;;  %v434_v58 = vld [vmem:[%s3197_s4 + $0x18] sm:$0xff]  ;;  %v433_v59 = vld [vmem:[%s3197_s4 + $0x10] sm:$0xff] }
  0x33   : > { %vm260_vm6 = vcmp.ge.s32.totalorder %v2456_v12, 2  ;;  %vm261_vm7 = vcmp.lt.s32.totalorder %v2456_v12, 18  ;;  %vm2466_vm8 = vmand %vm270_vm4, %vm271_vm5  ;;  %v432_v60 = vld [vmem:[%s3197_s4 + $0x8] sm:$0xff]  ;;  %v431_v61 = vld [vmem:[%s3197_s4] sm:$0xff]  ;;  %s3212_s22 = smov (!%p237_p7, %s2371_s22), 1 }
  0x34   : > { %vm262_vm9 = vmand %vm260_vm6, %vm261_vm7  ;;  %v429_v7 = vld [vmem:[%s3196_s3 + $0x10] sm:$0xff]  ;;  %s2203_s29 = smul.u32 96, %s3212_s22 }
  0x36   : > { %s3110_s7 = scalar_lea.vmem %s3198_s5, %s2203_s29 }
  0xa1   : > { %v255_v1 = vpop.permute.xlu0 %254 }
  0xa2   : > { %v256_v2 = vsel %vm253_vm0, %v255_v1, %v242_v0 }
  0xa3   : > { %257 = vrot.lane.b32.xlu0 %v256_v2, %s2316_s11 }
 0x115   : > { %v258_v4 = vpop.permute.xlu0 %257 }
 0x116   : > { %v259_v5 = vsel %vm253_vm0, %v258_v4, %v242_v0 }
 0x117   : > { %275 = vrot.lane.b32.xlu0 %v259_v5, %s2317_s27  ;;  %293 = vrot.lane.b32.xlu1 %v259_v5, %s2318_s10 }
 0x11b   : > { %284 = vrot.lane.b32.xlu1 %v259_v5, %s2319_s14  ;;  %314 = vperm.xlu0 %2249, %v250_v6   ;;  %v428_v6 = vld [vmem:[%s3196_s3 + $0x8] sm:$0xff] }
 0x11f   : > { %266 = vrot.lane.b32.xlu1 %v259_v5, %s2321_s17  ;;  %299 = vperm.xlu0 %2249, %v247_v8   ;;  %v430_v8 = vld [vmem:[%s3196_s3 + $0x18] sm:$0xff] }
 0x123   : > { %309 = vperm.xlu1 %2250, %v249_v9  }
 0x127   : > { %304 = vperm.xlu1 %2250, %v248_v10  }
 0x189   : > { %v294_v13 = vpop.permute.xlu1 %293  ;;  %v276_v16 = vpop.permute.xlu0 %275 }
 0x18a   : > { %2007 = vmatprep.subr.msk.mxu0 %vm289_vm2, %v294_v13 }
 0x18b   : > { %2008 = vmatpush3.msk.msra.mxu0 %vm289_vm2, %v294_v13 }
 0x18d   : > { %v285_v14 = vpop.permute.xlu1 %284 }
 0x18e   : > { %2009 = vmatprep.subr.msk.mxu0 %vm280_vm3, %v285_v14 }
 0x18f   : > { %2010 = vmatpush3.msk.msra.mxu0 %vm280_vm3, %v285_v14 }
 0x190   : > { %2011 = vmatprep.subr.mxu0 %v242_v0 }
 0x191   : > { %2012 = vmatpush3.msra.mxu0 %v242_v0  ;;  %v267_v17 = vpop.permute.xlu1 %266 }
 0x192   : > { %2013 = vmatprep.subr.msk.mxu0 %vm2466_vm8, %v276_v16 }
 0x193   : > { %2014 = vmatpush3.msk.msra.mxu0 %vm2466_vm8, %v276_v16 }
 0x194   : > { %2015 = vmatprep.subr.msk.mxu0 %vm262_vm9, %v267_v17 }
 0x195   : > { %2016 = vmatpush3.msk.msra.mxu0 %vm262_vm9, %v267_v17 }
 0x196   : > { %2018 = vmatmul.mubr.msk.f32.vlgmr.msra.gmra.mxu0 %vm317_vm1, %v244_v18  ;;  %v315_v22 = vpop.permute.xlu0 %314 }
 0x197   : > { %2020 = vmatprep.mubr.msk.f32.mxu0 %vm317_vm1, %v245_v19 }
 0x19a   : > { %2021 = vmatmul.mubr.msk.f32.gmra.mxu0 %vm317_vm1, %v246_v20  ;;  %v300_v26 = vpop.permute.xlu0 %299 }
 0x19e   : > { %v310_v21 = vpop.permute.xlu1 %309 }
 0x1a2   : > { %v305_v24 = vpop.permute.xlu1 %304 }
 0x256   : > { %v2019_v23 = vpop.f32.mrf.mxu0 }
 0x257   : > { %v402_v28 = vadd.f32 %v2019_v23, %v305_v24 }
 0x258   : > { %v396_v25 = vpop.f32.mrf.mxu0 }
 0x259   : > { %v397_v31 = vadd.f32 %v396_v25, %v300_v26  ;;  %v420_v34 = vmul.f32 0.1, %v402_v28  ;;  %vm416_vm12 = vcmp.ge.f32.partialorder %v402_v28, 0.0 }
 0x25a   : > { %v2022_v27 = vpop.f32.mrf.mxu0 }
 0x25b   : > { %v412_v29 = vadd.f32 %v2022_v27, %v315_v22  ;;  %v419_v37 = vmul.f32 0.1, %v397_v31  ;;  %vm415_vm13 = vcmp.ge.f32.partialorder %v397_v31, 0.0  ;;  %v2496_v39 = vsel %vm416_vm12, %v402_v28, %v420_v34 }
 0x25c   : > { %v406_v30 = vpop.f32.mrf.mxu0 }
 0x25d   : > { %vm418_vm10 = vcmp.ge.f32.partialorder %v412_v29, 0.0  ;;  %v422_v32 = vmul.f32 0.1, %v412_v29  ;;  %v407_v33 = vadd.f32 %v406_v30, %v310_v21  ;;  %v2500_v40 = vsel %vm415_vm13, %v397_v31, %v419_v37 }
 0x25f   : > { %v2488_v35 = vsel %vm418_vm10, %v412_v29, %v422_v32  ;;  %vm417_vm11 = vcmp.ge.f32.partialorder %v407_v33, 0.0  ;;  %v421_v36 = vmul.f32 0.1, %v407_v33 }
 0x260   : > { %444 = vrot.lane.b32.xlu1 %v2488_v35, %s2316_s11 }
 0x261   : > { %v2492_v38 = vsel %vm417_vm11, %v407_v33, %v421_v36 }
 0x262   : > { %441 = vrot.lane.b32.xlu0 %v2492_v38, %s2316_s11 }
 0x264   : > { %438 = vrot.lane.b32.xlu1 %v2496_v39, %s2316_s11 }
 0x266   : > { %435 = vrot.lane.b32.xlu0 %v2500_v40, %s2316_s11 }
 0x2d2   : > { %v445_v41 = vpop.permute.xlu1 %444 }
 0x2d3   : > { %v446_v42 = vsel %vm253_vm0, %v445_v41, %v2488_v35 }
 0x2d4   : > { %v442_v43 = vpop.permute.xlu0 %441  ;;  %453 = vrot.lane.b32.xlu1 %v446_v42, %s2316_s11 }
 0x2d5   : > { %v443_v44 = vsel %vm253_vm0, %v442_v43, %v2492_v38 }
 0x2d6   : > { %451 = vrot.lane.b32.xlu0 %v443_v44, %s2316_s11  ;;  %v439_v45 = vpop.permute.xlu1 %438 }
 0x2d7   : > { %v440_v46 = vsel %vm253_vm0, %v439_v45, %v2496_v39 }
 0x2d8   : > { %v436_v47 = vpop.permute.xlu0 %435  ;;  %449 = vrot.lane.b32.xlu1 %v440_v46, %s2316_s11 }
 0x2d9   : > { %v437_v48 = vsel %vm253_vm0, %v436_v47, %v2500_v40 }
 0x2da   : > { %447 = vrot.lane.b32.xlu0 %v437_v48, %s2316_s11 }
 0x346   : > { %v454_v49 = vpop.permute.xlu1 %453 }
 0x347   : > { %v458_v50 = vsel %vm253_vm0, %v454_v49, %v2488_v35 }
 0x348   : > { %v452_v51 = vpop.permute.xlu0 %451  ;;  %485 = vrot.lane.b32.xlu1 %v458_v50, %s2319_s14 }
 0x349   : > { %v457_v52 = vsel %vm253_vm0, %v452_v51, %v2492_v38  ;;  %v1800_v51 = vld [vmem:[%s3196_s3 + $0x20] sm:$0xff] }
 0x34a   : > { %483 = vrot.lane.b32.xlu0 %v457_v52, %s2319_s14  ;;  %v450_v53 = vpop.permute.xlu1 %449  ;;  %2077 = vmatprep.mubr.msk.f32.mxu0 %vm515_vm14, %v1800_v51 }
 0x34b   : > { %v456_v54 = vsel %vm253_vm0, %v450_v53, %v2496_v39  ;;  %v1806_v53 = vld [vmem:[%s3197_s4 + $0x30] sm:$0xff] }
 0x34c   : > { %v448_v55 = vpop.permute.xlu0 %447  ;;  %481 = vrot.lane.b32.xlu1 %v456_v54, %s2319_s14 }
 0x34d   : > { %v455_v56 = vsel %vm253_vm0, %v448_v55, %v2500_v40  ;;  %v1804_v55 = vld [vmem:[%s3197_s4 + $0x20] sm:$0xff] }
 0x34e   : > { %479 = vrot.lane.b32.xlu0 %v455_v56, %s2319_s14 }
 0x350   : > { %469 = vrot.lane.b32.xlu1 %v458_v50, %s2317_s27 }
 0x352   : > { %467 = vrot.lane.b32.xlu0 %v457_v52, %s2317_s27  ;;  %v1807_v52 = vld [vmem:[%s3197_s4 + $0x38] sm:$0xff] }
 0x354   : > { %465 = vrot.lane.b32.xlu1 %v456_v54, %s2317_s27  ;;  %v1805_v54 = vld [vmem:[%s3197_s4 + $0x28] sm:$0xff] }
 0x356   : > { %463 = vrot.lane.b32.xlu0 %v455_v56, %s2317_s27 }
 0x358   : > { %512 = vperm.xlu1 %2250, %v434_v58  }
 0x35a   : > { %507 = vperm.xlu0 %2249, %v433_v59  }
 0x35c   : > { %502 = vperm.xlu1 %2250, %v432_v60  }
 0x35e   : > { %497 = vperm.xlu0 %2249, %v431_v61  }
 0x3ba   : > { %v486_v62 = vpop.permute.xlu1 %485 }
 0x3bb   : > { %2023 = vmatprep.subr.msk.mxu1 %vm280_vm3, %v486_v62 }
 0x3bc   : > { %v484_v63 = vpop.permute.xlu0 %483  ;;  %2024 = vmatpush3.msk.msra.mxu1 %vm280_vm3, %v486_v62 }
 0x3bd   : > { %2025 = vmatprep.subr.msk.mxu1 %vm280_vm3, %v484_v63 }
 0x3be   : > { %2026 = vmatpush3.msk.msra.mxu1 %vm280_vm3, %v484_v63  ;;  %v482_v0 = vpop.permute.xlu1 %481 }
 0x3bf   : > { %2027 = vmatprep.subr.msk.mxu1 %vm280_vm3, %v482_v0 }
 0x3c0   : > { %v480_v1 = vpop.permute.xlu0 %479  ;;  %2028 = vmatpush3.msk.msra.mxu1 %vm280_vm3, %v482_v0  ;;  %v1801_v0 = vld [vmem:[%s3196_s3 + $0x28] sm:$0xff] }
 0x3c1   : > { %2029 = vmatprep.subr.msk.mxu1 %vm280_vm3, %v480_v1 }
 0x3c2   : > { %2030 = vmatpush3.msk.msra.mxu1 %vm280_vm3, %v480_v1  ;;  %v470_v2 = vpop.permute.xlu1 %469  ;;  %v1802_v1 = vld [vmem:[%s3196_s3 + $0x30] sm:$0xff] }
 0x3c3   : > { %2031 = vmatprep.subr.mxu1 %v2488_v35 }
 0x3c4   : > { %2032 = vmatpush3.msra.mxu1 %v2488_v35  ;;  %v468_v3 = vpop.permute.xlu0 %467 }
 0x3c5   : > { %2033 = vmatprep.subr.mxu1 %v2492_v38 }
 0x3c6   : > { %2034 = vmatpush3.msra.mxu1 %v2492_v38  ;;  %v466_v4 = vpop.permute.xlu1 %465 }
 0x3c7   : > { %2035 = vmatprep.subr.mxu1 %v2496_v39 }
 0x3c8   : > { %2036 = vmatpush3.msra.mxu1 %v2496_v39  ;;  %v464_v5 = vpop.permute.xlu0 %463 }
 0x3c9   : > { %2037 = vmatprep.subr.mxu1 %v2500_v40 }
 0x3ca   : > { %2038 = vmatpush3.msra.mxu1 %v2500_v40 }
 0x3cb   : > { %2039 = vmatprep.subr.msk.mxu1 %vm2466_vm8, %v470_v2 }
 0x3cc   : > { %2040 = vmatpush3.msk.msra.mxu1 %vm2466_vm8, %v470_v2  ;;  %v1803_v2 = vld [vmem:[%s3196_s3 + $0x38] sm:$0xff] }
 0x3cd   : > { %2041 = vmatprep.subr.msk.mxu1 %vm2466_vm8, %v468_v3 }
 0x3ce   : > { %2042 = vmatpush3.msk.msra.mxu1 %vm2466_vm8, %v468_v3 }
 0x3cf   : > { %2043 = vmatprep.subr.msk.mxu1 %vm2466_vm8, %v466_v4 }
 0x3d0   : > { %2044 = vmatpush3.msk.msra.mxu1 %vm2466_vm8, %v466_v4 }
 0x3d1   : > { %2045 = vmatprep.subr.msk.mxu1 %vm2466_vm8, %v464_v5 }
 0x3d2   : > { %2046 = vmatpush3.msk.msra.mxu1 %vm2466_vm8, %v464_v5 }
 0x3d3   : > { %2048 = vmatmul.mubr.msk.f32.vlgmr.msra.gmra.mxu1 %vm515_vm14, %v428_v6  ;;  %v513_v9 = vpop.permute.xlu1 %512 }
 0x3d4   : > { %2050 = vmatprep.mubr.msk.f32.mxu1 %vm515_vm14, %v429_v7 }
 0x3d5   : > { %v508_v10 = vpop.permute.xlu0 %507 }
 0x3d7   : > { %2051 = vmatmul.mubr.msk.f32.gmra.mxu1 %vm515_vm14, %v430_v8  ;;  %v503_v14 = vpop.permute.xlu1 %502 }
 0x3d9   : > { %v498_v19 = vpop.permute.xlu0 %497 }
 0x493   : > { %v2049_v11 = vpop.f32.mrf.mxu1 }
 0x494   : > { %v600_v17 = vadd.f32 %v2049_v11, %v503_v14 }
 0x495   : > { %v594_v13 = vpop.f32.mrf.mxu1 }
 0x496   : > { %v595_v21 = vadd.f32 %v594_v13, %v498_v19  ;;  %v618_v24 = vmul.f32 0.1, %v600_v17  ;;  %vm614_vm2 = vcmp.ge.f32.partialorder %v600_v17, 0.0 }
 0x497   : > { %v2052_v16 = vpop.f32.mrf.mxu1 }
 0x498   : > { %v610_v18 = vadd.f32 %v2052_v16, %v513_v9  ;;  %v617_v27 = vmul.f32 0.1, %v595_v21  ;;  %vm613_vm4 = vcmp.ge.f32.partialorder %v595_v21, 0.0  ;;  %v622_v29 = vsel %vm614_vm2, %v600_v17, %v618_v24 }
 0x499   : > { %v604_v20 = vpop.f32.mrf.mxu1 }
 0x49a   : > { %vm616_vm15 = vcmp.ge.f32.partialorder %v610_v18, 0.0  ;;  %v620_v22 = vmul.f32 0.1, %v610_v18  ;;  %v605_v23 = vadd.f32 %v604_v20, %v508_v10  ;;  %v621_v30 = vsel %vm613_vm4, %v595_v21, %v617_v27 }
 0x49c   : > { %v2600_v25 = vsel %vm616_vm15, %v610_v18, %v620_v22  ;;  %vm615_vm1 = vcmp.ge.f32.partialorder %v605_v23, 0.0  ;;  %v619_v26 = vmul.f32 0.1, %v605_v23 }
 0x49d   : > { %644 = vrot.lane.b32.xlu1 %v2600_v25, %s2316_s11 }
 0x49e   : > { %v623_v28 = vsel %vm615_vm1, %v605_v23, %v619_v26 }
 0x49f   : > { %641 = vrot.lane.b32.xlu0 %v623_v28, %s2316_s11 }
 0x4a1   : > { %638 = vrot.lane.b32.xlu1 %v622_v29, %s2316_s11 }
 0x4a3   : > { %635 = vrot.lane.b32.xlu0 %v621_v30, %s2316_s11 }
 0x50f   : > { %v645_v31 = vpop.permute.xlu1 %644 }
 0x510   : > { %v646_v32 = vsel %vm253_vm0, %v645_v31, %v2600_v25 }
 0x511   : > { %v642_v33 = vpop.permute.xlu0 %641  ;;  %653 = vrot.lane.b32.xlu1 %v646_v32, %s2316_s11 }
 0x512   : > { %v643_v34 = vsel %vm253_vm0, %v642_v33, %v623_v28 }
 0x513   : > { %651 = vrot.lane.b32.xlu0 %v643_v34, %s2316_s11  ;;  %v639_v36 = vpop.permute.xlu1 %638 }
 0x514   : > { %v640_v37 = vsel %vm253_vm0, %v639_v36, %v622_v29 }
 0x515   : > { %v636_v41 = vpop.permute.xlu0 %635  ;;  %649 = vrot.lane.b32.xlu1 %v640_v37, %s2316_s11 }
 0x516   : > { %v637_v42 = vsel %vm253_vm0, %v636_v41, %v621_v30 }
 0x517   : > { %647 = vrot.lane.b32.xlu0 %v637_v42, %s2316_s11 }
 0x583   : > { %v654_v43 = vpop.permute.xlu1 %653 }
 0x584   : > { %v658_v44 = vsel %vm253_vm0, %v654_v43, %v2600_v25 }
 0x585   : > { %v652_v45 = vpop.permute.xlu0 %651  ;;  %685 = vrot.lane.b32.xlu1 %v658_v44, %s2319_s14 }
 0x586   : > { %v657_v46 = vsel %vm253_vm0, %v652_v45, %v623_v28  ;;  %v1820_v45 = vld [vmem:[%s3196_s3 + $0x40] sm:$0xff] }
 0x587   : > { %683 = vrot.lane.b32.xlu0 %v657_v46, %s2319_s14  ;;  %v650_v47 = vpop.permute.xlu1 %649  ;;  %2107 = vmatprep.mubr.msk.f32.mxu1 %vm515_vm14, %v1820_v45 }
 0x588   : > { %v656_v48 = vsel %vm253_vm0, %v650_v47, %v622_v29  ;;  %v1826_v47 = vld [vmem:[%s3197_s4 + $0x50] sm:$0xff] }
 0x589   : > { %v648_v49 = vpop.permute.xlu0 %647  ;;  %681 = vrot.lane.b32.xlu1 %v656_v48, %s2319_s14 }
 0x58a   : > { %v655_v50 = vsel %vm253_vm0, %v648_v49, %v621_v30  ;;  %v1824_v49 = vld [vmem:[%s3197_s4 + $0x40] sm:$0xff] }
 0x58b   : > { %679 = vrot.lane.b32.xlu0 %v655_v50, %s2319_s14 }
 0x58d   : > { %669 = vrot.lane.b32.xlu1 %v658_v44, %s2317_s27 }
 0x58f   : > { %667 = vrot.lane.b32.xlu0 %v657_v46, %s2317_s27  ;;  %v1827_v46 = vld [vmem:[%s3197_s4 + $0x58] sm:$0xff] }
 0x591   : > { %665 = vrot.lane.b32.xlu1 %v656_v48, %s2317_s27  ;;  %v1825_v48 = vld [vmem:[%s3197_s4 + $0x48] sm:$0xff] }
 0x593   : > { %663 = vrot.lane.b32.xlu0 %v655_v50, %s2317_s27 }
 0x595   : > { %712 = vperm.xlu1 %2250, %v1807_v52  }
 0x597   : > { %707 = vperm.xlu0 %2249, %v1806_v53  }
 0x599   : > { %702 = vperm.xlu1 %2250, %v1805_v54  }
 0x59b   : > { %697 = vperm.xlu0 %2249, %v1804_v55  }
 0x5f7   : > { %v686_v56 = vpop.permute.xlu1 %685 }
 0x5f8   : > { %2053 = vmatprep.subr.msk.mxu0 %vm280_vm3, %v686_v56 }
 0x5f9   : > { %v684_v57 = vpop.permute.xlu0 %683  ;;  %2054 = vmatpush3.msk.msra.mxu0 %vm280_vm3, %v686_v56 }
 0x5fa   : > { %2055 = vmatprep.subr.msk.mxu0 %vm280_vm3, %v684_v57 }
 0x5fb   : > { %2056 = vmatpush3.msk.msra.mxu0 %vm280_vm3, %v684_v57  ;;  %v682_v58 = vpop.permute.xlu1 %681 }
 0x5fc   : > { %2057 = vmatprep.subr.msk.mxu0 %vm280_vm3, %v682_v58 }
 0x5fd   : > { %v680_v59 = vpop.permute.xlu0 %679  ;;  %2058 = vmatpush3.msk.msra.mxu0 %vm280_vm3, %v682_v58  ;;  %v1821_v58 = vld [vmem:[%s3196_s3 + $0x48] sm:$0xff] }
 0x5fe   : > { %2059 = vmatprep.subr.msk.mxu0 %vm280_vm3, %v680_v59 }
 0x5ff   : > { %2060 = vmatpush3.msk.msra.mxu0 %vm280_vm3, %v680_v59  ;;  %v670_v60 = vpop.permute.xlu1 %669  ;;  %v1822_v59 = vld [vmem:[%s3196_s3 + $0x50] sm:$0xff] }
 0x600   : > { %2061 = vmatprep.subr.mxu0 %v2600_v25 }
 0x601   : > { %2062 = vmatpush3.msra.mxu0 %v2600_v25  ;;  %v668_v61 = vpop.permute.xlu0 %667 }
 0x602   : > { %2063 = vmatprep.subr.mxu0 %v623_v28 }
 0x603   : > { %2064 = vmatpush3.msra.mxu0 %v623_v28  ;;  %v666_v62 = vpop.permute.xlu1 %665 }
 0x604   : > { %2065 = vmatprep.subr.mxu0 %v622_v29 }
 0x605   : > { %2066 = vmatpush3.msra.mxu0 %v622_v29  ;;  %v664_v63 = vpop.permute.xlu0 %663 }
 0x606   : > { %2067 = vmatprep.subr.mxu0 %v621_v30 }
 0x607   : > { %2068 = vmatpush3.msra.mxu0 %v621_v30 }
 0x608   : > { %2069 = vmatprep.subr.msk.mxu0 %vm2466_vm8, %v670_v60 }
 0x609   : > { %2070 = vmatpush3.msk.msra.mxu0 %vm2466_vm8, %v670_v60  ;;  %v1823_v60 = vld [vmem:[%s3196_s3 + $0x58] sm:$0xff] }
 0x60a   : > { %2071 = vmatprep.subr.msk.mxu0 %vm2466_vm8, %v668_v61 }
 0x60b   : > { %2072 = vmatpush3.msk.msra.mxu0 %vm2466_vm8, %v668_v61 }
 0x60c   : > { %2073 = vmatprep.subr.msk.mxu0 %vm2466_vm8, %v666_v62 }
 0x60d   : > { %2074 = vmatpush3.msk.msra.mxu0 %vm2466_vm8, %v666_v62 }
 0x60e   : > { %2075 = vmatprep.subr.msk.mxu0 %vm2466_vm8, %v664_v63 }
 0x60f   : > { %2076 = vmatpush3.msk.msra.mxu0 %vm2466_vm8, %v664_v63 }
 0x610   : > { %2078 = vmatmul.mubr.msk.f32.vlgmr.msra.gmra.mxu0 %vm515_vm14, %v1801_v0  ;;  %v713_v3 = vpop.permute.xlu1 %712 }
 0x611   : > { %2080 = vmatprep.mubr.msk.f32.mxu0 %vm515_vm14, %v1802_v1 }
 0x612   : > { %v708_v4 = vpop.permute.xlu0 %707 }
 0x614   : > { %2081 = vmatmul.mubr.msk.f32.gmra.mxu0 %vm515_vm14, %v1803_v2  ;;  %v703_v6 = vpop.permute.xlu1 %702 }
 0x616   : > { %v698_v9 = vpop.permute.xlu0 %697 }
 0x6d0   : > { %v2079_v5 = vpop.f32.mrf.mxu0 }
 0x6d1   : > { %v799_v8 = vadd.f32 %v2079_v5, %v703_v6 }
 0x6d2   : > { %v793_v7 = vpop.f32.mrf.mxu0 }
 0x6d3   : > { %v794_v11 = vadd.f32 %v793_v7, %v698_v9  ;;  %v817_v16 = vmul.f32 0.1, %v799_v8  ;;  %vm813_vm6 = vcmp.ge.f32.partialorder %v799_v8, 0.0 }
 0x6d4   : > { %v2082_v10 = vpop.f32.mrf.mxu0 }
 0x6d5   : > { %v809_v13 = vadd.f32 %v2082_v10, %v713_v3  ;;  %v816_v19 = vmul.f32 0.1, %v794_v11  ;;  %vm812_vm9 = vcmp.ge.f32.partialorder %v794_v11, 0.0  ;;  %v821_v23 = vsel %vm813_vm6, %v799_v8, %v817_v16 }
 0x6d6   : > { %v803_v14 = vpop.f32.mrf.mxu0  ;;  %v2700_v27 = vadd.f32 %v821_v23, %v2496_v39 }
 0x6d7   : > { %vm815_vm5 = vcmp.ge.f32.partialorder %v809_v13, 0.0  ;;  %v819_v17 = vmul.f32 0.1, %v809_v13  ;;  %v804_v18 = vadd.f32 %v803_v14, %v708_v4  ;;  %v820_v26 = vsel %vm812_vm9, %v794_v11, %v816_v19 }
 0x6d8   : > { %v2705_v28 = vadd.f32 %v820_v26, %v2500_v40 }
 0x6d9   : > { %v823_v20 = vsel %vm815_vm5, %v809_v13, %v819_v17  ;;  %vm814_vm7 = vcmp.ge.f32.partialorder %v804_v18, 0.0  ;;  %v818_v21 = vmul.f32 0.1, %v804_v18 }
 0x6da   : > { %v2692_v22 = vadd.f32 %v823_v20, %v2488_v35 }
 0x6db   : > { %v822_v24 = vsel %vm814_vm7, %v804_v18, %v818_v21 }
 0x6dc   : > { %v2695_v25 = vadd.f32 %v822_v24, %v2492_v38  ;;  %847 = vrot.lane.b32.xlu1 %v2692_v22, %s2316_s11 }
 0x6de   : > { %844 = vrot.lane.b32.xlu0 %v2695_v25, %s2316_s11 }
 0x6e0   : > { %841 = vrot.lane.b32.xlu1 %v2700_v27, %s2316_s11 }
 0x6e2   : > { %838 = vrot.lane.b32.xlu0 %v2705_v28, %s2316_s11 }
 0x74e   : > { %v848_v35 = vpop.permute.xlu1 %847 }
 0x74f   : > { %v849_v38 = vsel %vm253_vm0, %v848_v35, %v2692_v22 }
 0x750   : > { %v845_v29 = vpop.permute.xlu0 %844  ;;  %856 = vrot.lane.b32.xlu1 %v849_v38, %s2316_s11 }
 0x751   : > { %v846_v39 = vsel %vm253_vm0, %v845_v29, %v2695_v25 }
 0x752   : > { %854 = vrot.lane.b32.xlu0 %v846_v39, %s2316_s11  ;;  %v842_v40 = vpop.permute.xlu1 %841 }
 0x753   : > { %v843_v30 = vsel %vm253_vm0, %v842_v40, %v2700_v27 }
 0x754   : > { %v839_v31 = vpop.permute.xlu0 %838  ;;  %852 = vrot.lane.b32.xlu1 %v843_v30, %s2316_s11 }
 0x755   : > { %v840_v32 = vsel %vm253_vm0, %v839_v31, %v2705_v28 }
 0x756   : > { %850 = vrot.lane.b32.xlu0 %v840_v32, %s2316_s11 }
 0x7c2   : > { %v857_v33 = vpop.permute.xlu1 %856 }
 0x7c3   : > { %v861_v34 = vsel %vm253_vm0, %v857_v33, %v2692_v22 }
 0x7c4   : > { %v855_v36 = vpop.permute.xlu0 %854  ;;  %888 = vrot.lane.b32.xlu1 %v861_v34, %s2319_s14 }
 0x7c5   : > { %v860_v37 = vsel %vm253_vm0, %v855_v36, %v2695_v25  ;;  %v1840_v36 = vld [vmem:[%s3196_s3 + $0x60] sm:$0xff] }
 0x7c6   : > { %886 = vrot.lane.b32.xlu0 %v860_v37, %s2319_s14  ;;  %v853_v41 = vpop.permute.xlu1 %852  ;;  %2137 = vmatprep.mubr.msk.f32.mxu0 %vm515_vm14, %v1840_v36 }
 0x7c7   : > { %v859_v42 = vsel %vm253_vm0, %v853_v41, %v2700_v27  ;;  %v1846_v41 = vld [vmem:[%s3197_s4 + $0x70] sm:$0xff] }
 0x7c8   : > { %v851_v43 = vpop.permute.xlu0 %850  ;;  %884 = vrot.lane.b32.xlu1 %v859_v42, %s2319_s14 }
 0x7c9   : > { %v858_v44 = vsel %vm253_vm0, %v851_v43, %v2705_v28  ;;  %v1844_v43 = vld [vmem:[%s3197_s4 + $0x60] sm:$0xff] }
 0x7ca   : > { %882 = vrot.lane.b32.xlu0 %v858_v44, %s2319_s14 }
 0x7cc   : > { %872 = vrot.lane.b32.xlu1 %v861_v34, %s2317_s27 }
 0x7ce   : > { %870 = vrot.lane.b32.xlu0 %v860_v37, %s2317_s27  ;;  %v1847_v37 = vld [vmem:[%s3197_s4 + $0x78] sm:$0xff] }
 0x7d0   : > { %868 = vrot.lane.b32.xlu1 %v859_v42, %s2317_s27  ;;  %v1845_v42 = vld [vmem:[%s3197_s4 + $0x68] sm:$0xff] }
 0x7d2   : > { %866 = vrot.lane.b32.xlu0 %v858_v44, %s2317_s27 }
 0x7d4   : > { %915 = vperm.xlu1 %2250, %v1827_v46  }
 0x7d6   : > { %910 = vperm.xlu0 %2249, %v1826_v47  }
 0x7d8   : > { %905 = vperm.xlu1 %2250, %v1825_v48  }
 0x7da   : > { %900 = vperm.xlu0 %2249, %v1824_v49  }
 0x836   : > { %v889_v50 = vpop.permute.xlu1 %888 }
 0x837   : > { %2083 = vmatprep.subr.msk.mxu1 %vm280_vm3, %v889_v50 }
 0x838   : > { %v887_v51 = vpop.permute.xlu0 %886  ;;  %2084 = vmatpush3.msk.msra.mxu1 %vm280_vm3, %v889_v50 }
 0x839   : > { %2085 = vmatprep.subr.msk.mxu1 %vm280_vm3, %v887_v51 }
 0x83a   : > { %2086 = vmatpush3.msk.msra.mxu1 %vm280_vm3, %v887_v51  ;;  %v885_v52 = vpop.permute.xlu1 %884 }
 0x83b   : > { %2087 = vmatprep.subr.msk.mxu1 %vm280_vm3, %v885_v52 }
 0x83c   : > { %v883_v53 = vpop.permute.xlu0 %882  ;;  %2088 = vmatpush3.msk.msra.mxu1 %vm280_vm3, %v885_v52  ;;  %v1841_v52 = vld [vmem:[%s3196_s3 + $0x68] sm:$0xff] }
 0x83d   : > { %2089 = vmatprep.subr.msk.mxu1 %vm280_vm3, %v883_v53 }
 0x83e   : > { %2090 = vmatpush3.msk.msra.mxu1 %vm280_vm3, %v883_v53  ;;  %v873_v54 = vpop.permute.xlu1 %872  ;;  %v1842_v53 = vld [vmem:[%s3196_s3 + $0x70] sm:$0xff] }
 0x83f   : > { %2091 = vmatprep.subr.mxu1 %v2692_v22 }
 0x840   : > { %2092 = vmatpush3.msra.mxu1 %v2692_v22  ;;  %v871_v55 = vpop.permute.xlu0 %870 }
 0x841   : > { %2093 = vmatprep.subr.mxu1 %v2695_v25 }
 0x842   : > { %2094 = vmatpush3.msra.mxu1 %v2695_v25  ;;  %v869_v56 = vpop.permute.xlu1 %868 }
 0x843   : > { %2095 = vmatprep.subr.mxu1 %v2700_v27 }
 0x844   : > { %2096 = vmatpush3.msra.mxu1 %v2700_v27  ;;  %v867_v57 = vpop.permute.xlu0 %866 }
 0x845   : > { %2097 = vmatprep.subr.mxu1 %v2705_v28 }
 0x846   : > { %2098 = vmatpush3.msra.mxu1 %v2705_v28 }
 0x847   : > { %2099 = vmatprep.subr.msk.mxu1 %vm2466_vm8, %v873_v54 }
 0x848   : > { %2100 = vmatpush3.msk.msra.mxu1 %vm2466_vm8, %v873_v54  ;;  %v1843_v54 = vld [vmem:[%s3196_s3 + $0x78] sm:$0xff] }
 0x849   : > { %2101 = vmatprep.subr.msk.mxu1 %vm2466_vm8, %v871_v55 }
 0x84a   : > { %2102 = vmatpush3.msk.msra.mxu1 %vm2466_vm8, %v871_v55 }
 0x84b   : > { %2103 = vmatprep.subr.msk.mxu1 %vm2466_vm8, %v869_v56 }
 0x84c   : > { %2104 = vmatpush3.msk.msra.mxu1 %vm2466_vm8, %v869_v56 }
 0x84d   : > { %2105 = vmatprep.subr.msk.mxu1 %vm2466_vm8, %v867_v57 }
 0x84e   : > { %2106 = vmatpush3.msk.msra.mxu1 %vm2466_vm8, %v867_v57 }
 0x84f   : > { %2108 = vmatmul.mubr.msk.f32.vlgmr.msra.gmra.mxu1 %vm515_vm14, %v1821_v58  ;;  %v916_v61 = vpop.permute.xlu1 %915 }
 0x850   : > { %2110 = vmatprep.mubr.msk.f32.mxu1 %vm515_vm14, %v1822_v59 }
 0x851   : > { %v911_v62 = vpop.permute.xlu0 %910 }
 0x853   : > { %2111 = vmatmul.mubr.msk.f32.gmra.mxu1 %vm515_vm14, %v1823_v60  ;;  %v906_v1 = vpop.permute.xlu1 %905 }
 0x855   : > { %v901_v5 = vpop.permute.xlu0 %900 }
 0x90f   : > { %v2109_v63 = vpop.f32.mrf.mxu1 }
 0x910   : > { %v1002_v3 = vadd.f32 %v2109_v63, %v906_v1 }
 0x911   : > { %v996_v0 = vpop.f32.mrf.mxu1 }
 0x912   : > { %v997_v7 = vadd.f32 %v996_v0, %v901_v5  ;;  %v1020_v10 = vmul.f32 0.1, %v1002_v3  ;;  %vm1016_vm12 = vcmp.ge.f32.partialorder %v1002_v3, 0.0 }
 0x913   : > { %v2112_v2 = vpop.f32.mrf.mxu1 }
 0x914   : > { %v1012_v4 = vadd.f32 %v2112_v2, %v916_v61  ;;  %v1019_v14 = vmul.f32 0.1, %v997_v7  ;;  %vm1015_vm13 = vcmp.ge.f32.partialorder %v997_v7, 0.0  ;;  %v1024_v17 = vsel %vm1016_vm12, %v1002_v3, %v1020_v10 }
 0x915   : > { %v1006_v6 = vpop.f32.mrf.mxu1 }
 0x916   : > { %vm1018_vm10 = vcmp.ge.f32.partialorder %v1012_v4, 0.0  ;;  %v1022_v8 = vmul.f32 0.1, %v1012_v4  ;;  %v1007_v9 = vadd.f32 %v1006_v6, %v911_v62  ;;  %v1023_v18 = vsel %vm1015_vm13, %v997_v7, %v1019_v14 }
 0x918   : > { %v2807_v11 = vsel %vm1018_vm10, %v1012_v4, %v1022_v8  ;;  %vm1017_vm11 = vcmp.ge.f32.partialorder %v1007_v9, 0.0  ;;  %v1021_v13 = vmul.f32 0.1, %v1007_v9 }
 0x919   : > { %1046 = vrot.lane.b32.xlu1 %v2807_v11, %s2316_s11 }
 0x91a   : > { %v1025_v16 = vsel %vm1017_vm11, %v1007_v9, %v1021_v13  ;;  %vm1692_vm11 = vcmask 130048  }
 0x91b   : > { %1043 = vrot.lane.b32.xlu0 %v1025_v16, %s2316_s11 }
 0x91d   : > { %1040 = vrot.lane.b32.xlu1 %v1024_v17, %s2316_s11 }
 0x91f   : > { %1037 = vrot.lane.b32.xlu0 %v1023_v18, %s2316_s11 }
 0x98b   : > { %v1047_v19 = vpop.permute.xlu1 %1046 }
 0x98c   : > { %v1048_v20 = vsel %vm253_vm0, %v1047_v19, %v2807_v11 }
 0x98d   : > { %v1044_v21 = vpop.permute.xlu0 %1043  ;;  %1055 = vrot.lane.b32.xlu1 %v1048_v20, %s2316_s11 }
 0x98e   : > { %v1045_v23 = vsel %vm253_vm0, %v1044_v21, %v1025_v16 }
 0x98f   : > { %1053 = vrot.lane.b32.xlu0 %v1045_v23, %s2316_s11  ;;  %v1041_v24 = vpop.permute.xlu1 %1040 }
 0x990   : > { %v1042_v26 = vsel %vm253_vm0, %v1041_v24, %v1024_v17 }
 0x991   : > { %v1038_v35 = vpop.permute.xlu0 %1037  ;;  %1051 = vrot.lane.b32.xlu1 %v1042_v26, %s2316_s11 }
 0x992   : > { %v1039_v38 = vsel %vm253_vm0, %v1038_v35, %v1023_v18 }
 0x993   : > { %1049 = vrot.lane.b32.xlu0 %v1039_v38, %s2316_s11 }
 0x9ff   : > { %v1056_v29 = vpop.permute.xlu1 %1055 }
 0xa00   : > { %v1060_v39 = vsel %vm253_vm0, %v1056_v29, %v2807_v11 }
 0xa01   : > { %v1054_v40 = vpop.permute.xlu0 %1053  ;;  %1087 = vrot.lane.b32.xlu1 %v1060_v39, %s2319_s14 }
 0xa02   : > { %v1059_v30 = vsel %vm253_vm0, %v1054_v40, %v1025_v16  ;;  %v1860_v40 = vld [vmem:[%s3196_s3 + $0x80] sm:$0xff] }
 0xa03   : > { %1085 = vrot.lane.b32.xlu0 %v1059_v30, %s2319_s14  ;;  %v1052_v31 = vpop.permute.xlu1 %1051  ;;  %2167 = vmatprep.mubr.msk.f32.mxu1 %vm515_vm14, %v1860_v40 }
 0xa04   : > { %v1058_v32 = vsel %vm253_vm0, %v1052_v31, %v1024_v17  ;;  %v1866_v31 = vld [vmem:[%s3197_s4 + $0x90] sm:$0xff] }
 0xa05   : > { %v1050_v33 = vpop.permute.xlu0 %1049  ;;  %1083 = vrot.lane.b32.xlu1 %v1058_v32, %s2319_s14 }
 0xa06   : > { %v1057_v34 = vsel %vm253_vm0, %v1050_v33, %v1023_v18  ;;  %v1864_v33 = vld [vmem:[%s3197_s4 + $0x80] sm:$0xff] }
 0xa07   : > { %1081 = vrot.lane.b32.xlu0 %v1057_v34, %s2319_s14 }
 0xa09   : > { %1071 = vrot.lane.b32.xlu1 %v1060_v39, %s2317_s27 }
 0xa0b   : > { %1069 = vrot.lane.b32.xlu0 %v1059_v30, %s2317_s27  ;;  %v1867_v30 = vld [vmem:[%s3197_s4 + $0x98] sm:$0xff] }
 0xa0d   : > { %1067 = vrot.lane.b32.xlu1 %v1058_v32, %s2317_s27  ;;  %v1865_v32 = vld [vmem:[%s3197_s4 + $0x88] sm:$0xff] }
 0xa0f   : > { %1065 = vrot.lane.b32.xlu0 %v1057_v34, %s2317_s27 }
 0xa11   : > { %1114 = vperm.xlu1 %2250, %v1847_v37  }
 0xa13   : > { %1109 = vperm.xlu0 %2249, %v1846_v41  }
 0xa15   : > { %1104 = vperm.xlu1 %2250, %v1845_v42  }
 0xa17   : > { %1099 = vperm.xlu0 %2249, %v1844_v43  }
 0xa73   : > { %v1088_v44 = vpop.permute.xlu1 %1087 }
 0xa74   : > { %2113 = vmatprep.subr.msk.mxu0 %vm280_vm3, %v1088_v44 }
 0xa75   : > { %v1086_v45 = vpop.permute.xlu0 %1085  ;;  %2114 = vmatpush3.msk.msra.mxu0 %vm280_vm3, %v1088_v44 }
 0xa76   : > { %2115 = vmatprep.subr.msk.mxu0 %vm280_vm3, %v1086_v45 }
 0xa77   : > { %2116 = vmatpush3.msk.msra.mxu0 %vm280_vm3, %v1086_v45  ;;  %v1084_v46 = vpop.permute.xlu1 %1083 }
 0xa78   : > { %2117 = vmatprep.subr.msk.mxu0 %vm280_vm3, %v1084_v46 }
 0xa79   : > { %v1082_v47 = vpop.permute.xlu0 %1081  ;;  %2118 = vmatpush3.msk.msra.mxu0 %vm280_vm3, %v1084_v46  ;;  %v1861_v46 = vld [vmem:[%s3196_s3 + $0x88] sm:$0xff] }
 0xa7a   : > { %2119 = vmatprep.subr.msk.mxu0 %vm280_vm3, %v1082_v47 }
 0xa7b   : > { %2120 = vmatpush3.msk.msra.mxu0 %vm280_vm3, %v1082_v47  ;;  %v1072_v48 = vpop.permute.xlu1 %1071  ;;  %v1862_v47 = vld [vmem:[%s3196_s3 + $0x90] sm:$0xff] }
 0xa7c   : > { %2121 = vmatprep.subr.mxu0 %v2807_v11 }
 0xa7d   : > { %2122 = vmatpush3.msra.mxu0 %v2807_v11  ;;  %v1070_v49 = vpop.permute.xlu0 %1069 }
 0xa7e   : > { %2123 = vmatprep.subr.mxu0 %v1025_v16 }
 0xa7f   : > { %2124 = vmatpush3.msra.mxu0 %v1025_v16  ;;  %v1068_v50 = vpop.permute.xlu1 %1067 }
 0xa80   : > { %2125 = vmatprep.subr.mxu0 %v1024_v17 }
 0xa81   : > { %2126 = vmatpush3.msra.mxu0 %v1024_v17  ;;  %v1066_v51 = vpop.permute.xlu0 %1065 }
 0xa82   : > { %2127 = vmatprep.subr.mxu0 %v1023_v18 }
 0xa83   : > { %2128 = vmatpush3.msra.mxu0 %v1023_v18 }
 0xa84   : > { %2129 = vmatprep.subr.msk.mxu0 %vm2466_vm8, %v1072_v48 }
 0xa85   : > { %2130 = vmatpush3.msk.msra.mxu0 %vm2466_vm8, %v1072_v48  ;;  %v1863_v48 = vld [vmem:[%s3196_s3 + $0x98] sm:$0xff] }
 0xa86   : > { %2131 = vmatprep.subr.msk.mxu0 %vm2466_vm8, %v1070_v49 }
 0xa87   : > { %2132 = vmatpush3.msk.msra.mxu0 %vm2466_vm8, %v1070_v49 }
 0xa88   : > { %2133 = vmatprep.subr.msk.mxu0 %vm2466_vm8, %v1068_v50 }
 0xa89   : > { %2134 = vmatpush3.msk.msra.mxu0 %vm2466_vm8, %v1068_v50 }
 0xa8a   : > { %2135 = vmatprep.subr.msk.mxu0 %vm2466_vm8, %v1066_v51 }
 0xa8b   : > { %2136 = vmatpush3.msk.msra.mxu0 %vm2466_vm8, %v1066_v51 }
 0xa8c   : > { %2138 = vmatmul.mubr.msk.f32.vlgmr.msra.gmra.mxu0 %vm515_vm14, %v1841_v52  ;;  %v1115_v55 = vpop.permute.xlu1 %1114 }
 0xa8d   : > { %2140 = vmatprep.mubr.msk.f32.mxu0 %vm515_vm14, %v1842_v53 }
 0xa8e   : > { %v1110_v56 = vpop.permute.xlu0 %1109 }
 0xa90   : > { %2141 = vmatmul.mubr.msk.f32.gmra.mxu0 %vm515_vm14, %v1843_v54  ;;  %v1105_v58 = vpop.permute.xlu1 %1104 }
 0xa92   : > { %v1100_v61 = vpop.permute.xlu0 %1099 }
 0xb4c   : > { %v2139_v57 = vpop.f32.mrf.mxu0 }
 0xb4d   : > { %v1201_v60 = vadd.f32 %v2139_v57, %v1105_v58 }
 0xb4e   : > { %v1195_v59 = vpop.f32.mrf.mxu0 }
 0xb4f   : > { %v1196_v63 = vadd.f32 %v1195_v59, %v1100_v61  ;;  %v1219_v2 = vmul.f32 0.1, %v1201_v60  ;;  %vm1215_vm1 = vcmp.ge.f32.partialorder %v1201_v60, 0.0 }
 0xb50   : > { %v2142_v62 = vpop.f32.mrf.mxu0 }
 0xb51   : > { %v1211_v0 = vadd.f32 %v2142_v62, %v1115_v55  ;;  %v1218_v5 = vmul.f32 0.1, %v1196_v63  ;;  %vm1214_vm4 = vcmp.ge.f32.partialorder %v1196_v63, 0.0  ;;  %v1223_v9 = vsel %vm1215_vm1, %v1201_v60, %v1219_v2 }
 0xb52   : > { %v1205_v1 = vpop.f32.mrf.mxu0  ;;  %v2907_v14 = vadd.f32 %v1223_v9, %v2700_v27 }
 0xb53   : > { %vm1217_vm15 = vcmp.ge.f32.partialorder %v1211_v0, 0.0  ;;  %v1221_v3 = vmul.f32 0.1, %v1211_v0  ;;  %v1206_v4 = vadd.f32 %v1205_v1, %v1110_v56  ;;  %v1222_v13 = vsel %vm1214_vm4, %v1196_v63, %v1218_v5 }
 0xb54   : > { %v2912_v16 = vadd.f32 %v1222_v13, %v2705_v28 }
 0xb55   : > { %v1225_v6 = vsel %vm1217_vm15, %v1211_v0, %v1221_v3  ;;  %vm1216_vm2 = vcmp.ge.f32.partialorder %v1206_v4, 0.0  ;;  %v1220_v7 = vmul.f32 0.1, %v1206_v4 }
 0xb56   : > { %v2899_v8 = vadd.f32 %v1225_v6, %v2692_v22 }
 0xb57   : > { %v1224_v10 = vsel %vm1216_vm2, %v1206_v4, %v1220_v7 }
 0xb58   : > { %v2902_v11 = vadd.f32 %v1224_v10, %v2695_v25  ;;  %1249 = vrot.lane.b32.xlu1 %v2899_v8, %s2316_s11 }
 0xb5a   : > { %1246 = vrot.lane.b32.xlu0 %v2902_v11, %s2316_s11 }
 0xb5c   : > { %1243 = vrot.lane.b32.xlu1 %v2907_v14, %s2316_s11 }
 0xb5e   : > { %1240 = vrot.lane.b32.xlu0 %v2912_v16, %s2316_s11 }
 0xbca   : > { %v1250_v22 = vpop.permute.xlu1 %1249 }
 0xbcb   : > { %v1251_v25 = vsel %vm253_vm0, %v1250_v22, %v2899_v8 }
 0xbcc   : > { %v1247_v17 = vpop.permute.xlu0 %1246  ;;  %1258 = vrot.lane.b32.xlu1 %v1251_v25, %s2316_s11 }
 0xbcd   : > { %v1248_v27 = vsel %vm253_vm0, %v1247_v17, %v2902_v11 }
 0xbce   : > { %1256 = vrot.lane.b32.xlu0 %v1248_v27, %s2316_s11  ;;  %v1244_v28 = vpop.permute.xlu1 %1243 }
 0xbcf   : > { %v1245_v18 = vsel %vm253_vm0, %v1244_v28, %v2907_v14 }
 0xbd0   : > { %v1241_v19 = vpop.permute.xlu0 %1240  ;;  %1254 = vrot.lane.b32.xlu1 %v1245_v18, %s2316_s11 }
 0xbd1   : > { %v1242_v20 = vsel %vm253_vm0, %v1241_v19, %v2912_v16 }
 0xbd2   : > { %1252 = vrot.lane.b32.xlu0 %v1242_v20, %s2316_s11 }
 0xc3e   : > { %v1259_v21 = vpop.permute.xlu1 %1258 }
 0xc3f   : > { %v1263_v23 = vsel %vm253_vm0, %v1259_v21, %v2899_v8 }
 0xc40   : > { %v1257_v24 = vpop.permute.xlu0 %1256  ;;  %1290 = vrot.lane.b32.xlu1 %v1263_v23, %s2319_s14 }
 0xc41   : > { %v1262_v26 = vsel %vm253_vm0, %v1257_v24, %v2902_v11  ;;  %v1880_v24 = vld [vmem:[%s3196_s3 + $0xa0] sm:$0xff] }
 0xc42   : > { %1288 = vrot.lane.b32.xlu0 %v1262_v26, %s2319_s14  ;;  %v1255_v35 = vpop.permute.xlu1 %1254  ;;  %2197 = vmatprep.mubr.msk.f32.mxu0 %vm515_vm14, %v1880_v24 }
 0xc43   : > { %v1261_v38 = vsel %vm253_vm0, %v1255_v35, %v2907_v14  ;;  %v1885_v35 = vld [vmem:[%s3197_s4 + $0xa8] sm:$0xff] }
 0xc44   : > { %v1253_v29 = vpop.permute.xlu0 %1252  ;;  %1286 = vrot.lane.b32.xlu1 %v1261_v38, %s2319_s14 }
 0xc45   : > { %v1260_v39 = vsel %vm253_vm0, %v1253_v29, %v2912_v16  ;;  %v1887_v29 = vld [vmem:[%s3197_s4 + $0xb8] sm:$0xff] }
 0xc46   : > { %1284 = vrot.lane.b32.xlu0 %v1260_v39, %s2319_s14 }
 0xc48   : > { %1274 = vrot.lane.b32.xlu1 %v1263_v23, %s2317_s27 }
 0xc4a   : > { %1272 = vrot.lane.b32.xlu0 %v1262_v26, %s2317_s27  ;;  %v1884_v26 = vld [vmem:[%s3197_s4 + $0xa0] sm:$0xff] }
 0xc4c   : > { %1270 = vrot.lane.b32.xlu1 %v1261_v38, %s2317_s27  ;;  %v1886_v38 = vld [vmem:[%s3197_s4 + $0xb0] sm:$0xff] }
 0xc4e   : > { %1268 = vrot.lane.b32.xlu0 %v1260_v39, %s2317_s27 }
 0xc50   : > { %1317 = vperm.xlu1 %2250, %v1867_v30  }
 0xc52   : > { %1312 = vperm.xlu0 %2249, %v1866_v31  }
 0xc54   : > { %1307 = vperm.xlu1 %2250, %v1865_v32  }
 0xc56   : > { %1302 = vperm.xlu0 %2249, %v1864_v33  }
 0xcb2   : > { %v1291_v34 = vpop.permute.xlu1 %1290 }
 0xcb3   : > { %2143 = vmatprep.subr.msk.mxu1 %vm280_vm3, %v1291_v34 }
 0xcb4   : > { %v1289_v36 = vpop.permute.xlu0 %1288  ;;  %2144 = vmatpush3.msk.msra.mxu1 %vm280_vm3, %v1291_v34 }
 0xcb5   : > { %2145 = vmatprep.subr.msk.mxu1 %vm280_vm3, %v1289_v36 }
 0xcb6   : > { %2146 = vmatpush3.msk.msra.mxu1 %vm280_vm3, %v1289_v36  ;;  %v1287_v37 = vpop.permute.xlu1 %1286 }
 0xcb7   : > { %2147 = vmatprep.subr.msk.mxu1 %vm280_vm3, %v1287_v37 }
 0xcb8   : > { %v1285_v41 = vpop.permute.xlu0 %1284  ;;  %2148 = vmatpush3.msk.msra.mxu1 %vm280_vm3, %v1287_v37  ;;  %v1881_v37 = vld [vmem:[%s3196_s3 + $0xa8] sm:$0xff] }
 0xcb9   : > { %2149 = vmatprep.subr.msk.mxu1 %vm280_vm3, %v1285_v41 }
 0xcba   : > { %2150 = vmatpush3.msk.msra.mxu1 %vm280_vm3, %v1285_v41  ;;  %v1275_v42 = vpop.permute.xlu1 %1274  ;;  %v1882_v41 = vld [vmem:[%s3196_s3 + $0xb0] sm:$0xff] }
 0xcbb   : > { %2151 = vmatprep.subr.mxu1 %v2899_v8 }
 0xcbc   : > { %2152 = vmatpush3.msra.mxu1 %v2899_v8  ;;  %v1273_v43 = vpop.permute.xlu0 %1272 }
 0xcbd   : > { %2153 = vmatprep.subr.mxu1 %v2902_v11 }
 0xcbe   : > { %2154 = vmatpush3.msra.mxu1 %v2902_v11  ;;  %v1271_v44 = vpop.permute.xlu1 %1270 }
 0xcbf   : > { %2155 = vmatprep.subr.mxu1 %v2907_v14 }
 0xcc0   : > { %2156 = vmatpush3.msra.mxu1 %v2907_v14  ;;  %v1269_v45 = vpop.permute.xlu0 %1268 }
 0xcc1   : > { %2157 = vmatprep.subr.mxu1 %v2912_v16 }
 0xcc2   : > { %2158 = vmatpush3.msra.mxu1 %v2912_v16 }
 0xcc3   : > { %2159 = vmatprep.subr.msk.mxu1 %vm2466_vm8, %v1275_v42 }
 0xcc4   : > { %2160 = vmatpush3.msk.msra.mxu1 %vm2466_vm8, %v1275_v42  ;;  %v1883_v42 = vld [vmem:[%s3196_s3 + $0xb8] sm:$0xff] }
 0xcc5   : > { %2161 = vmatprep.subr.msk.mxu1 %vm2466_vm8, %v1273_v43 }
 0xcc6   : > { %2162 = vmatpush3.msk.msra.mxu1 %vm2466_vm8, %v1273_v43 }
 0xcc7   : > { %2163 = vmatprep.subr.msk.mxu1 %vm2466_vm8, %v1271_v44 }
 0xcc8   : > { %2164 = vmatpush3.msk.msra.mxu1 %vm2466_vm8, %v1271_v44 }
 0xcc9   : > { %2165 = vmatprep.subr.msk.mxu1 %vm2466_vm8, %v1269_v45 }
 0xcca   : > { %2166 = vmatpush3.msk.msra.mxu1 %vm2466_vm8, %v1269_v45 }
 0xccb   : > { %2168 = vmatmul.mubr.msk.f32.vlgmr.msra.gmra.mxu1 %vm515_vm14, %v1861_v46  ;;  %v1318_v49 = vpop.permute.xlu1 %1317 }
 0xccc   : > { %2170 = vmatprep.mubr.msk.f32.mxu1 %vm515_vm14, %v1862_v47 }
 0xccd   : > { %v1313_v50 = vpop.permute.xlu0 %1312 }
 0xccf   : > { %2171 = vmatmul.mubr.msk.f32.gmra.mxu1 %vm515_vm14, %v1863_v48  ;;  %v1308_v53 = vpop.permute.xlu1 %1307 }
 0xcd1   : > { %v1303_v57 = vpop.permute.xlu0 %1302 }
 0xd8b   : > { %v2169_v51 = vpop.f32.mrf.mxu1 }
 0xd8c   : > { %v1404_v55 = vadd.f32 %v2169_v51, %v1308_v53 }
 0xd8d   : > { %v1398_v52 = vpop.f32.mrf.mxu1 }
 0xd8e   : > { %v1399_v59 = vadd.f32 %v1398_v52, %v1303_v57  ;;  %v1422_v62 = vmul.f32 0.1, %v1404_v55  ;;  %vm1418_vm7 = vcmp.ge.f32.partialorder %v1404_v55, 0.0 }
 0xd8f   : > { %v2172_v54 = vpop.f32.mrf.mxu1 }
 0xd90   : > { %v1414_v56 = vadd.f32 %v2172_v54, %v1318_v49  ;;  %v1421_v1 = vmul.f32 0.1, %v1399_v59  ;;  %vm1417_vm9 = vcmp.ge.f32.partialorder %v1399_v59, 0.0  ;;  %v1426_v3 = vsel %vm1418_vm7, %v1404_v55, %v1422_v62 }
 0xd91   : > { %v1408_v58 = vpop.f32.mrf.mxu1 }
 0xd92   : > { %vm1420_vm5 = vcmp.ge.f32.partialorder %v1414_v56, 0.0  ;;  %v1424_v60 = vmul.f32 0.1, %v1414_v56  ;;  %v1409_v61 = vadd.f32 %v1408_v58, %v1313_v50  ;;  %v1425_v4 = vsel %vm1417_vm9, %v1399_v59, %v1421_v1 }
 0xd94   : > { %v3014_v63 = vsel %vm1420_vm5, %v1414_v56, %v1424_v60  ;;  %vm1419_vm6 = vcmp.ge.f32.partialorder %v1409_v61, 0.0  ;;  %v1423_v0 = vmul.f32 0.1, %v1409_v61 }
 0xd95   : > { %1448 = vrot.lane.b32.xlu1 %v3014_v63, %s2316_s11 }
 0xd96   : > { %v1427_v2 = vsel %vm1419_vm6, %v1409_v61, %v1423_v0 }
 0xd97   : > { %1445 = vrot.lane.b32.xlu0 %v1427_v2, %s2316_s11 }
 0xd99   : > { %1442 = vrot.lane.b32.xlu1 %v1426_v3, %s2316_s11 }
 0xd9b   : > { %1439 = vrot.lane.b32.xlu0 %v1425_v4, %s2316_s11 }
 0xe07   : > { %v1449_v5 = vpop.permute.xlu1 %1448 }
 0xe08   : > { %v1450_v6 = vsel %vm253_vm0, %v1449_v5, %v3014_v63 }
 0xe09   : > { %v1446_v7 = vpop.permute.xlu0 %1445  ;;  %1457 = vrot.lane.b32.xlu1 %v1450_v6, %s2316_s11 }
 0xe0a   : > { %v1447_v9 = vsel %vm253_vm0, %v1446_v7, %v1427_v2 }
 0xe0b   : > { %1455 = vrot.lane.b32.xlu0 %v1447_v9, %s2316_s11  ;;  %v1443_v10 = vpop.permute.xlu1 %1442 }
 0xe0c   : > { %v1444_v13 = vsel %vm253_vm0, %v1443_v10, %v1426_v3 }
 0xe0d   : > { %v1440_v22 = vpop.permute.xlu0 %1439  ;;  %1453 = vrot.lane.b32.xlu1 %v1444_v13, %s2316_s11 }
 0xe0e   : > { %v1441_v25 = vsel %vm253_vm0, %v1440_v22, %v1425_v4 }
 0xe0f   : > { %1451 = vrot.lane.b32.xlu0 %v1441_v25, %s2316_s11 }
 0xe7b   : > { %v1458_v17 = vpop.permute.xlu1 %1457 }
 0xe7c   : > { %v1462_v27 = vsel %vm253_vm0, %v1458_v17, %v3014_v63 }
 0xe7d   : > { %v1456_v28 = vpop.permute.xlu0 %1455  ;;  %1489 = vrot.lane.b32.xlu1 %v1462_v27, %s2319_s14 }
 0xe7e   : > { %v1461_v18 = vsel %vm253_vm0, %v1456_v28, %v1427_v2 }
 0xe7f   : > { %1487 = vrot.lane.b32.xlu0 %v1461_v18, %s2319_s14  ;;  %v1454_v19 = vpop.permute.xlu1 %1453 }
 0xe80   : > { %v1460_v20 = vsel %vm253_vm0, %v1454_v19, %v1426_v3 }
 0xe81   : > { %v1452_v21 = vpop.permute.xlu0 %1451  ;;  %1485 = vrot.lane.b32.xlu1 %v1460_v20, %s2319_s14 }
 0xe82   : > { %v1459_v23 = vsel %vm253_vm0, %v1452_v21, %v1425_v4 }
 0xe83   : > { %1483 = vrot.lane.b32.xlu0 %v1459_v23, %s2319_s14 }
 0xe85   : > { %1473 = vrot.lane.b32.xlu1 %v1462_v27, %s2317_s27 }
 0xe87   : > { %1471 = vrot.lane.b32.xlu0 %v1461_v18, %s2317_s27 }
 0xe89   : > { %1469 = vrot.lane.b32.xlu1 %v1460_v20, %s2317_s27 }
 0xe8b   : > { %1467 = vrot.lane.b32.xlu0 %v1459_v23, %s2317_s27 }
 0xe8d   : > { %1501 = vperm.xlu1 %2250, %v1884_v26  }
 0xe8f   : > { %1506 = vperm.xlu0 %2249, %v1885_v35  }
 0xe91   : > { %1511 = vperm.xlu1 %2250, %v1886_v38  }
 0xe93   : > { %1516 = vperm.xlu0 %2249, %v1887_v29  }
 0xeef   : > { %v1490_v39 = vpop.permute.xlu1 %1489 }
 0xef0   : > { %2173 = vmatprep.subr.msk.mxu0 %vm280_vm3, %v1490_v39 }
 0xef1   : > { %v1488_v40 = vpop.permute.xlu0 %1487  ;;  %2174 = vmatpush3.msk.msra.mxu0 %vm280_vm3, %v1490_v39 }
 0xef2   : > { %2175 = vmatprep.subr.msk.mxu0 %vm280_vm3, %v1488_v40 }
 0xef3   : > { %2176 = vmatpush3.msk.msra.mxu0 %vm280_vm3, %v1488_v40  ;;  %v1486_v30 = vpop.permute.xlu1 %1485 }
 0xef4   : > { %2177 = vmatprep.subr.msk.mxu0 %vm280_vm3, %v1486_v30 }
 0xef5   : > { %v1484_v31 = vpop.permute.xlu0 %1483  ;;  %2178 = vmatpush3.msk.msra.mxu0 %vm280_vm3, %v1486_v30 }
 0xef6   : > { %2179 = vmatprep.subr.msk.mxu0 %vm280_vm3, %v1484_v31 }
 0xef7   : > { %2180 = vmatpush3.msk.msra.mxu0 %vm280_vm3, %v1484_v31  ;;  %v1474_v32 = vpop.permute.xlu1 %1473 }
 0xef8   : > { %2181 = vmatprep.subr.mxu0 %v3014_v63 }
 0xef9   : > { %2182 = vmatpush3.msra.mxu0 %v3014_v63  ;;  %v1472_v33 = vpop.permute.xlu0 %1471 }
 0xefa   : > { %2183 = vmatprep.subr.mxu0 %v1427_v2 }
 0xefb   : > { %2184 = vmatpush3.msra.mxu0 %v1427_v2  ;;  %v1470_v34 = vpop.permute.xlu1 %1469 }
 0xefc   : > { %2185 = vmatprep.subr.mxu0 %v1426_v3 }
 0xefd   : > { %2186 = vmatpush3.msra.mxu0 %v1426_v3  ;;  %v1468_v36 = vpop.permute.xlu0 %1467 }
 0xefe   : > { %2187 = vmatprep.subr.mxu0 %v1425_v4 }
 0xeff   : > { %2188 = vmatpush3.msra.mxu0 %v1425_v4 }
 0xf00   : > { %2189 = vmatprep.subr.msk.mxu0 %vm2466_vm8, %v1474_v32 }
 0xf01   : > { %2190 = vmatpush3.msk.msra.mxu0 %vm2466_vm8, %v1474_v32 }
 0xf02   : > { %2191 = vmatprep.subr.msk.mxu0 %vm2466_vm8, %v1472_v33 }
 0xf03   : > { %2192 = vmatpush3.msk.msra.mxu0 %vm2466_vm8, %v1472_v33 }
 0xf04   : > { %2193 = vmatprep.subr.msk.mxu0 %vm2466_vm8, %v1470_v34 }
 0xf05   : > { %2194 = vmatpush3.msk.msra.mxu0 %vm2466_vm8, %v1470_v34 }
 0xf06   : > { %2195 = vmatprep.subr.msk.mxu0 %vm2466_vm8, %v1468_v36 }
 0xf07   : > { %2196 = vmatpush3.msk.msra.mxu0 %vm2466_vm8, %v1468_v36 }
 0xf08   : > { %2198 = vmatmul.mubr.msk.f32.vlgmr.msra.gmra.mxu0 %vm515_vm14, %v1881_v37  ;;  %v1502_v44 = vpop.permute.xlu1 %1501 }
 0xf09   : > { %2200 = vmatprep.mubr.msk.f32.mxu0 %vm515_vm14, %v1882_v41 }
 0xf0a   : > { %v1507_v43 = vpop.permute.xlu0 %1506 }
 0xf0c   : > { %2201 = vmatmul.mubr.msk.f32.gmra.mxu0 %vm515_vm14, %v1883_v42  ;;  %v1512_v55 = vpop.permute.xlu1 %1511 }
 0xf0e   : > { %v1517_v50 = vpop.permute.xlu0 %1516 }
 0xfc8   : > { %v2199_v45 = vpop.f32.mrf.mxu0 }
 0xfc9   : > { %v1603_v46 = vadd.f32 %v2199_v45, %v1507_v43 }
 0xfca   : > { %v1597_v47 = vpop.f32.mrf.mxu0 }
 0xfcb   : > { %vm1617_vm10 = vcmp.ge.f32.partialorder %v1603_v46, 0.0  ;;  %v1621_v48 = vmul.f32 0.1, %v1603_v46  ;;  %v1598_v49 = vadd.f32 %v1597_v47, %v1502_v44 }
 0xfcc   : > { %v2202_v51 = vpop.f32.mrf.mxu0 }
 0xfcd   : > { %v1625_v52 = vsel %vm1617_vm10, %v1603_v46, %v1621_v48  ;;  %vm1616_vm14 = vcmp.ge.f32.partialorder %v1598_v49, 0.0  ;;  %v1620_v53 = vmul.f32 0.1, %v1598_v49  ;;  %v1613_v54 = vadd.f32 %v2202_v51, %v1517_v50 }
 0xfce   : > { %v1629_v56 = vadd.f32 %v1625_v52, %v2907_v14  ;;  %v1607_v57 = vpop.f32.mrf.mxu0 }
 0xfcf   : > { %v1624_v58 = vsel %vm1616_vm14, %v1598_v49, %v1620_v53  ;;  %vm1619_vm12 = vcmp.ge.f32.partialorder %v1613_v54, 0.0  ;;  %v1623_v59 = vmul.f32 0.1, %v1613_v54  ;;  %v1608_v60 = vadd.f32 %v1607_v57, %v1512_v55 }
 0xfd0   : > { %1698 = vst.msk [vmem:[%s3110_s7 + $0x28] sm:$0xff] %vm1692_vm11, %v1629_v56  ;;  %v1628_v61 = vadd.f32 %v1624_v58, %v2912_v16  ;;  %1635 = vrot.lane.b32.xlu0 %v1629_v56, %s2316_s11 }
 0xfd1   : > { %v1627_v62 = vsel %vm1619_vm12, %v1613_v54, %v1623_v59  ;;  %vm1618_vm13 = vcmp.ge.f32.partialorder %v1608_v60, 0.0  ;;  %v1622_v63 = vmul.f32 0.1, %v1608_v60 }
 0xfd2   : > { %1697 = vst.msk [vmem:[%s3110_s7 + $0x20] sm:$0xff] %vm1692_vm11, %v1628_v61  ;;  %v1631_v14 = vadd.f32 %v1627_v62, %v2899_v8  ;;  %1632 = vrot.lane.b32.xlu1 %v1628_v61, %s2316_s11 }
 0xfd3   : > { %v1626_v0 = vsel %vm1618_vm13, %v1608_v60, %v1622_v63 }
 0xfd4   : > { %1700 = vst.msk [vmem:[%s3110_s7 + $0x38] sm:$0xff] %vm1692_vm11, %v1631_v14  ;;  %v1630_v1 = vadd.f32 %v1626_v0, %v2902_v11  ;;  %1641 = vrot.lane.b32.xlu0 %v1631_v14, %s2316_s11 }
 0xfd6   : > { %1699 = vst.msk [vmem:[%s3110_s7 + $0x30] sm:$0xff] %vm1692_vm11, %v1630_v1  ;;  %1638 = vrot.lane.b32.xlu1 %v1630_v1, %s2316_s11 }
0x1042   : > { %v1636_v16 = vpop.permute.xlu0 %1635 }
0x1043   : > { %v1637_v2 = vsel %vm253_vm0, %v1636_v16, %v1629_v56 }
0x1044   : > { %1646 = vrot.lane.b32.xlu0 %v1637_v2, %s2316_s11  ;;  %v1633_v3 = vpop.permute.xlu1 %1632 }
0x1045   : > { %v1634_v8 = vsel %vm253_vm0, %v1633_v3, %v1628_v61 }
0x1046   : > { %v1642_v4 = vpop.permute.xlu0 %1641  ;;  %1644 = vrot.lane.b32.xlu1 %v1634_v8, %s2316_s11 }
0x1047   : > { %v1643_v5 = vsel %vm253_vm0, %v1642_v4, %v1631_v14 }
0x1048   : > { %1650 = vrot.lane.b32.xlu0 %v1643_v5, %s2316_s11  ;;  %v1639_v11 = vpop.permute.xlu1 %1638 }
0x1049   : > { %v1640_v6 = vsel %vm253_vm0, %v1639_v11, %v1630_v1 }
0x104a   : > { %1648 = vrot.lane.b32.xlu1 %v1640_v6, %s2316_s11 }
0x10b6   : > { %v1647_v7 = vpop.permute.xlu0 %1646 }
0x10b7   : > { %v1653_v9 = vsel %vm253_vm0, %v1647_v7, %v1629_v56 }
0x10b8   : > { %1662 = vrot.lane.b32.xlu0 %v1653_v9, %s2317_s27  ;;  %v1645_v10 = vpop.permute.xlu1 %1644 }
0x10b9   : > { %v1652_v13 = vsel %vm253_vm0, %v1645_v10, %v1628_v61 }
0x10ba   : > { %1660 = vrot.lane.b32.xlu1 %v1652_v13, %s2317_s27  ;;  %v1651_v22 = vpop.permute.xlu0 %1650 }
0x10bb   : > { %v1655_v17 = vsel %vm253_vm0, %v1651_v22, %v1631_v14 }
0x10bc   : > { %1678 = vrot.lane.b32.xlu0 %v1653_v9, %s2319_s14  ;;  %v1649_v25 = vpop.permute.xlu1 %1648 }
0x10bd   : > { %v1654_v27 = vsel %vm253_vm0, %v1649_v25, %v1630_v1 }
0x10be   : > { %1676 = vrot.lane.b32.xlu1 %v1652_v13, %s2319_s14 }
0x10c0   : > { %1666 = vrot.lane.b32.xlu0 %v1655_v17, %s2317_s27 }
0x10c2   : > { %1664 = vrot.lane.b32.xlu1 %v1654_v27, %s2317_s27 }
0x10c4   : > { %1682 = vrot.lane.b32.xlu0 %v1655_v17, %s2319_s14 }
0x10c6   : > { %1680 = vrot.lane.b32.xlu1 %v1654_v27, %s2319_s14 }
0x112a   : > { %v1663_v28 = vpop.permute.xlu0 %1662 }
0x112b   : > { %v1673_v18 = vsel %vm2466_vm8, %v1663_v28, 0.0 }
0x112c   : > { %1694 = vst.msk [vmem:[%s3110_s7 + $0x8] sm:$0xff] %vm1692_vm11, %v1673_v18  ;;  %v1661_v19 = vpop.permute.xlu1 %1660 }
0x112d   : > { %v1672_v20 = vsel %vm2466_vm8, %v1661_v19, 0.0 }
0x112e   : > { %1693 = vst.msk [vmem:[%s3110_s7] sm:$0xff] %vm1692_vm11, %v1672_v20  ;;  %v1679_v21 = vpop.permute.xlu0 %1678 }
0x112f   : > { %v1689_v23 = vsel %vm280_vm3, %v1679_v21, 0.0 }
0x1130   : > { %1702 = vst.msk [vmem:[%s3110_s7 + $0x48] sm:$0xff] %vm1692_vm11, %v1689_v23  ;;  %v1677_v24 = vpop.permute.xlu1 %1676 }
0x1131   : > { %v1688_v26 = vsel %vm280_vm3, %v1677_v24, 0.0 }
0x1132   : > { %1701 = vst.msk [vmem:[%s3110_s7 + $0x40] sm:$0xff] %vm1692_vm11, %v1688_v26  ;;  %v1667_v35 = vpop.permute.xlu0 %1666 }
0x1133   : > { %v1675_v38 = vsel %vm2466_vm8, %v1667_v35, 0.0 }
0x1134   : > { %1696 = vst.msk [vmem:[%s3110_s7 + $0x18] sm:$0xff] %vm1692_vm11, %v1675_v38  ;;  %v1665_v29 = vpop.permute.xlu1 %1664 }
0x1135   : > { %v1674_v39 = vsel %vm2466_vm8, %v1665_v29, 0.0 }
0x1136   : > { %1695 = vst.msk [vmem:[%s3110_s7 + $0x10] sm:$0xff] %vm1692_vm11, %v1674_v39  ;;  %v1683_v40 = vpop.permute.xlu0 %1682 }
0x1137   : > { %v1691_v30 = vsel %vm280_vm3, %v1683_v40, 0.0 }
0x1138   : > { %1704 = vst.msk [vmem:[%s3110_s7 + $0x58] sm:$0xff] %vm1692_vm11, %v1691_v30  ;;  %v1681_v31 = vpop.permute.xlu1 %1680 }
0x1139   : > { %v1690_v32 = vsel %vm280_vm3, %v1681_v31, 0.0 }
0x113a   : > { %1703 = vst.msk [vmem:[%s3110_s7 + $0x50] sm:$0xff] %vm1692_vm11, %v1690_v32 }
0x113b PF: > { %p15_p8 = scmp.ge.s32.totalorder %s2374_s23, 4   ;;  %s3207_s18 = smov %s2305_s19 }
0x113c   : > { %s3208_s19 = smov %s2309_s20  ;;  %s3209_s20 = smov %s2384_s26 }
0x113d   : > { %s3210_s21 = smov %s2374_s23  ;;  %17 = sbr.rel (!%p15_p8) target bundleno = 3 (0x3), region = 90 }
0x1142   :  { %1726 = vsyncpa [#allocation3], 1 }
0x1143   :  { %1728 = vsyncpa [#allocation3 + $0x1], 1 }

</bundles_post_ra>
